<compile_context>
chip_gen: v7x
topology: tpu7x:2x2x1
jax: 0.10.0
libtpu: 0.0.40
codegen_flags: <defaults>
</compile_context>

<pallas_src>
import functools
import math

import jax
import jax.numpy as jnp
from jax.experimental import pallas as pl
from jax.experimental.pallas import tpu as pltpu


def _round_up(n, m):
    return ((n + m - 1) // m) * m


def _mish(v):
    # mish(x) = x * tanh(softplus(x)) = x * (e^2 + 2e) / (e^2 + 2e + 2), e = e^x
    # clamp keeps exp finite; for x >= 20 the ratio is 1.0 in f32 so mish(x)=x.
    e = jnp.exp(jnp.minimum(v, 20.0))
    n = e * (e + 2.0)
    return v * n * pl.reciprocal(n + 2.0, approx=True)


def mlp_kernel(xs_ref, time_ref,
               w_time_ref, wm1_ref, wm2_ref, wf1_ref, wf2_ref, b_ref,
               mid_ref, out_ref,
               xt_ref,
               *, t_dim, xs_pad, mid_dim, out_pad):
    half = t_dim // 2
    hid1 = wm1_ref.shape[1]     # 512
    hid2 = wf1_ref.shape[1]     # 256
    bf16 = jnp.bfloat16

    # ---- SinusoidalPosEmb(time): constants hoisted to (1, t_dim) ----------
    j = jax.lax.broadcasted_iota(jnp.int32, (1, t_dim), 1)
    is_sin = j < half
    k = jnp.where(is_sin, j, j - half).astype(jnp.float32)
    inv_freq = jnp.exp(k * (-math.log(10000.0) / (half - 1)))   # (1, t_dim)
    arg = time_ref[...] * inv_freq                              # (tb, t_dim)
    temb = jnp.where(is_sin, jnp.sin(arg), jnp.cos(arg))        # == cat(sin, cos)

    # ---- time_mlp: Linear(t, 2t) -> Mish -> Linear(2t, t) -----------------
    wt1 = w_time_ref[0:t_dim, 0:2 * t_dim]                      # (t, 2t)  bf16
    wt2 = w_time_ref[t_dim:3 * t_dim, 0:t_dim]                  # (2t, t)  bf16
    bt1 = b_ref[0:1, 0:2 * t_dim]
    bt2 = b_ref[1:2, 0:t_dim]
    h = jnp.dot(temb.astype(bf16), wt1, preferred_element_type=jnp.float32) + bt1
    h = _mish(h)
    t = jnp.dot(h.astype(bf16), wt2, preferred_element_type=jnp.float32) + bt2

    # ---- mid_layer: single merged K=(xs_pad+t_dim) matmul via VMEM scratch --
    xt_ref[:, 0:xs_pad] = xs_ref[...]                           # bf16 copy
    xt_ref[:, xs_pad:xs_pad + t_dim] = t.astype(bf16)           # 16-lane masked vst
    bm1 = b_ref[2:3, 0:hid1]
    bm2 = b_ref[3:4, 0:mid_dim]
    h = jnp.dot(xt_ref[...], wm1_ref[...],
                preferred_element_type=jnp.float32) + bm1
    h = _mish(h)
    mid = _mish(jnp.dot(h.astype(bf16), wm2_ref[...],
                        preferred_element_type=jnp.float32) + bm2)
    mid_ref[...] = mid

    # ---- final_layer: Linear -> Mish -> Linear -> ReLU (lane-dense out) ----
    bf1 = b_ref[4:5, 0:hid2]
    bf2 = b_ref[5:6, 0:out_pad]
    h = _mish(jnp.dot(mid.astype(bf16), wf1_ref[...],
                      preferred_element_type=jnp.float32) + bf1)
    out = jnp.dot(h.astype(bf16), wf2_ref[...],
                  preferred_element_type=jnp.float32) + bf2
    out_ref[...] = jnp.maximum(out, 0.0)


# ---------------------------------------------------------------------------
# Parameter construction / packing
# ---------------------------------------------------------------------------
def init_params(key, state_dim, action_dim, mid_dim, t_dim=16):
    """Deterministic synthetic parameters (f32, weights as (in, out))."""
    ks = jax.random.split(key, 12)

    def w(k, shape, scale=0.05):
        return (scale * jax.random.normal(k, shape)).astype(jnp.float32)

    def b(k, n):
        return (0.01 * jax.random.normal(k, (1, n))).astype(jnp.float32)

    return dict(
        wt1=w(ks[0], (t_dim, 2 * t_dim)), bt1=b(ks[1], 2 * t_dim),
        wt2=w(ks[2], (2 * t_dim, t_dim)), bt2=b(ks[3], t_dim),
        wm1x=w(ks[4], (action_dim, 512)),
        wm1t=w(ks[5], (t_dim, 512)),
        wm1s=w(ks[6], (state_dim, 512)),
        bm1=b(ks[7], 512),
        wm2=w(ks[8], (512, mid_dim)), bm2=b(ks[9], mid_dim),
        wf1=w(ks[10], (mid_dim, 256)), bf1=b(ks[11], 256),
        wf2=w(jax.random.fold_in(key, 99), (256, action_dim)),
        bf2=b(jax.random.fold_in(key, 100), action_dim),
    )


def pack_params(params, state_dim, action_dim, mid_dim, t_dim=16):
    """Pack per-layer tensors into 6 kernel operands (bf16 weights, f32 biases)."""
    bf16 = jnp.bfloat16
    xs_dim = action_dim + state_dim
    xs_pad = _round_up(xs_dim, 16)            # bf16 row-tile alignment
    out_pad = _round_up(action_dim, 128)      # lane-dense final output

    # time-MLP weights: rows [0:t) = wt1, rows [t:3t) = wt2
    w_time = jnp.zeros((3 * t_dim, 2 * t_dim), bf16)
    w_time = w_time.at[0:t_dim, 0:2 * t_dim].set(params["wt1"].astype(bf16))
    w_time = w_time.at[t_dim:3 * t_dim, 0:t_dim].set(params["wt2"].astype(bf16))

    # mid_layer first Linear, packed to match the kernel-side cat([x, state, t])
    wm1 = jnp.zeros((xs_pad + t_dim, 512), bf16)
    wm1 = wm1.at[0:action_dim, :].set(params["wm1x"].astype(bf16))
    wm1 = wm1.at[action_dim:xs_dim, :].set(params["wm1s"].astype(bf16))
    wm1 = wm1.at[xs_pad:xs_pad + t_dim, :].set(params["wm1t"].astype(bf16))

    # final Linear padded to 128 output lanes (zero columns past action_dim)
    wf2 = jnp.zeros((256, out_pad), bf16)
    wf2 = wf2.at[:, 0:action_dim].set(params["wf2"].astype(bf16))

    # all biases in one (8, W) f32 buffer, one row each (rows 6-7 padding)
    bw = _round_up(max(512, mid_dim, 256, 2 * t_dim, out_pad), 128)
    biases = jnp.zeros((8, bw), jnp.float32)
    biases = biases.at[0, 0:2 * t_dim].set(params["bt1"][0])
    biases = biases.at[1, 0:t_dim].set(params["bt2"][0])
    biases = biases.at[2, 0:512].set(params["bm1"][0])
    biases = biases.at[3, 0:mid_dim].set(params["bm2"][0])
    biases = biases.at[4, 0:256].set(params["bf1"][0])
    biases = biases.at[5, 0:action_dim].set(params["bf2"][0])

    return dict(
        w_time=w_time,
        wm1=wm1,
        wm2=params["wm2"].astype(bf16),
        wf1=params["wf1"].astype(bf16),
        wf2=wf2,
        biases=biases,
        xs_pad=xs_pad,
        out_pad=out_pad,
        action_dim=action_dim,
    )


# ---------------------------------------------------------------------------
# Forward
# ---------------------------------------------------------------------------
def mlp_model_forward(x, state, time, packed, t_dim=16, batch_tile=512):
    """x: (B, action_dim), state: (B, state_dim), time: (B,). Returns (final, mid)."""
    B = x.shape[0]
    action_dim = x.shape[1]
    state_dim = state.shape[1]
    mid_dim = packed["wm2"].shape[1]
    xs_dim = action_dim + state_dim
    xs_pad = packed["xs_pad"]
    out_pad = packed["out_pad"]
    hid1 = packed["wm1"].shape[1]
    hid2 = packed["wf1"].shape[1]

    # wrapper-side concat of [x, state] (weights packed to match), pad lanes,
    # cast to bf16 (halves input DMA; weights are bf16 anyway).
    xs = jnp.concatenate([x, state], axis=1).astype(jnp.float32)
    if xs_pad > xs_dim:
        xs = jnp.pad(xs, ((0, 0), (0, xs_pad - xs_dim)))
    xs = xs.astype(jnp.bfloat16)
    tcol = time.astype(jnp.float32).reshape(B, 1)

    # Batch tiling: multiple of 16 rows (bf16 input), capped at ceil(B/2) so the
    # grid has >= 2 "parallel" steps whenever B allows (both v7x TCs get work),
    # default up to 512 rows per tile on v5e/v6e to amortize per-step overhead.
    batch_tile = _round_up(max(16, batch_tile), 16)
    tb = min(batch_tile, max(16, _round_up(-(-B // 2), 16)))
    B_pad = _round_up(B, tb)
    if B_pad > B:
        xs = jnp.pad(xs, ((0, B_pad - B), (0, 0)))
        tcol = jnp.pad(tcol, ((0, B_pad - B), (0, 0)))
    nb = B_pad // tb

    kernel = functools.partial(
        mlp_kernel, t_dim=t_dim, xs_pad=xs_pad,
        mid_dim=mid_dim, out_pad=out_pad)

    weight_spec = lambda shape: pl.BlockSpec(shape, lambda i: (0, 0))
    in_specs = [
        pl.BlockSpec((tb, xs_pad), lambda i: (i, 0)),       # xs (bf16)
        pl.BlockSpec((tb, 1), lambda i: (i, 0)),            # time column (f32)
        weight_spec(packed["w_time"].shape),
        weight_spec(packed["wm1"].shape),
        weight_spec(packed["wm2"].shape),
        weight_spec(packed["wf1"].shape),
        weight_spec(packed["wf2"].shape),
        weight_spec(packed["biases"].shape),
    ]
    out_specs = (
        pl.BlockSpec((tb, mid_dim), lambda i: (i, 0)),
        pl.BlockSpec((tb, out_pad), lambda i: (i, 0)),
    )

    inputs = (xs, tcol, packed["w_time"], packed["wm1"], packed["wm2"],
              packed["wf1"], packed["wf2"], packed["biases"])

    flops = 2 * B_pad * (t_dim * 2 * t_dim + 2 * t_dim * t_dim
                         + (xs_pad + t_dim) * hid1 + hid1 * mid_dim
                         + mid_dim * hid2 + hid2 * out_pad)
    transcendentals = B_pad * (2 * t_dim + 2 * (2 * t_dim + hid1 + mid_dim + hid2))
    bytes_accessed = (sum(int(a.size) * a.dtype.itemsize for a in inputs)
                      + B_pad * (mid_dim + out_pad) * 4)

    mid, final = pl.pallas_call(
        kernel,
        out_shape=(jax.ShapeDtypeStruct((B_pad, mid_dim), jnp.float32),
                   jax.ShapeDtypeStruct((B_pad, out_pad), jnp.float32)),
        grid_spec=pltpu.PrefetchScalarGridSpec(
            num_scalar_prefetch=0,
            grid=(nb,),
            in_specs=in_specs,
            out_specs=out_specs,
            scratch_shapes=[pltpu.VMEM((tb, xs_pad + t_dim), jnp.bfloat16)]),
        compiler_params=pltpu.CompilerParams(
            dimension_semantics=("parallel",),
            vmem_limit_bytes=32 * 1024 * 1024),
        cost_estimate=pl.CostEstimate(
            flops=int(flops),
            transcendentals=int(transcendentals),
            bytes_accessed=int(bytes_accessed)),
    )(*inputs)

    return final[:B, :action_dim], mid[:B]


if __name__ == "__main__":
    # Small synthetic sizes: input_dim(state)=24, action_dim=8, mid_dim=128, batch=8
    B, STATE_DIM, ACTION_DIM, MID_DIM, T_DIM = 8, 24, 8, 128, 16

    key = jax.random.PRNGKey(0)
    kx, ks, kt, kp = jax.random.split(key, 4)

    x = jax.random.normal(kx, (B, ACTION_DIM), dtype=jnp.float32)     # noisy action
    state = jax.random.normal(ks, (B, STATE_DIM), dtype=jnp.float32)  # conditioning state
    time = jax.random.randint(kt, (B,), 0, 1000).astype(jnp.float32)  # diffusion timestep

    raw = init_params(kp, STATE_DIM, ACTION_DIM, MID_DIM, T_DIM)
    packed = pack_params(raw, STATE_DIM, ACTION_DIM, MID_DIM, T_DIM)

    final, mid = mlp_model_forward(x, state, time, packed, T_DIM)
    jax.block_until_ready((final, mid))

    assert final.shape == (B, ACTION_DIM)
    assert mid.shape == (B, MID_DIM)
    assert bool(jnp.isfinite(final).all()) and bool(jnp.isfinite(mid).all())
    assert bool((final >= 0.0).all())   # final ReLU
    print("KERNEL_OK")
</pallas_src>

<mosaic_0001>
module attributes {stable_mosaic.version = 11 : i64} {
  func.func @mlp_kernel(%arg0: i32, %arg1: memref<16x32xbf16, #tpu.memory_space<vmem>>, %arg2: memref<16x1xf32, #tpu.memory_space<vmem>>, %arg3: memref<48x32xbf16, #tpu.memory_space<vmem>>, %arg4: memref<48x512xbf16, #tpu.memory_space<vmem>>, %arg5: memref<512x128xbf16, #tpu.memory_space<vmem>>, %arg6: memref<128x256xbf16, #tpu.memory_space<vmem>>, %arg7: memref<256x128xbf16, #tpu.memory_space<vmem>>, %arg8: memref<8x512xf32, #tpu.memory_space<vmem>>, %arg9: memref<16x128xf32, #tpu.memory_space<vmem>>, %arg10: memref<16x128xf32, #tpu.memory_space<vmem>>, %arg11: memref<16x48xbf16, #tpu.memory_space<vmem>>) attributes {dimension_semantics = [#tpu.dimension_semantics<parallel>], iteration_bounds = array<i64: 1>, scalar_prefetch = 0 : i64, scratch_operands = 1 : i64, tpu.core_type = #tpu.core_type<tc>, window_params = [{transform_indices = @transform_0, window_bounds = array<i64: 16, 32>}, {transform_indices = @transform_1, window_bounds = array<i64: 16, 1>}, {pipeline_mode = #tpu.pipeline_mode<synchronous>, transform_indices = @transform_2, window_bounds = array<i64: 48, 32>}, {pipeline_mode = #tpu.pipeline_mode<synchronous>, transform_indices = @transform_3, window_bounds = array<i64: 48, 512>}, {pipeline_mode = #tpu.pipeline_mode<synchronous>, transform_indices = @transform_4, window_bounds = array<i64: 512, 128>}, {pipeline_mode = #tpu.pipeline_mode<synchronous>, transform_indices = @transform_5, window_bounds = array<i64: 128, 256>}, {pipeline_mode = #tpu.pipeline_mode<synchronous>, transform_indices = @transform_6, window_bounds = array<i64: 256, 128>}, {pipeline_mode = #tpu.pipeline_mode<synchronous>, transform_indices = @transform_7, window_bounds = array<i64: 8, 512>}, {transform_indices = @transform_8, window_bounds = array<i64: 16, 128>}, {transform_indices = @transform_9, window_bounds = array<i64: 16, 128>}]} {
    %0 = tpu.iota {dimensions = array<i32: 1>} : vector<1x16xi32>
    %c8_i32 = arith.constant 8 : i32
    %1 = vector.broadcast %c8_i32 : i32 to vector<1x16xi32>
    %2 = arith.cmpi slt, %0, %1 : vector<1x16xi32>
    %c8_i32_0 = arith.constant 8 : i32
    %3 = vector.broadcast %c8_i32_0 : i32 to vector<1x16xi32>
    %4 = arith.subi %0, %3 : vector<1x16xi32>
    %5 = arith.select %2, %0, %4 : vector<1x16xi1>, vector<1x16xi32>
    %6 = arith.sitofp %5 : vector<1x16xi32> to vector<1x16xf32>
    %cst = arith.constant -1.31576288 : f32
    %7 = vector.broadcast %cst : f32 to vector<1x16xf32>
    %8 = arith.mulf %6, %7 : vector<1x16xf32>
    %9 = math.exp %8 : vector<1x16xf32>
    %c0 = arith.constant 0 : index
    %c0_1 = arith.constant 0 : index
    %10 = vector.load %arg2[%c0, %c0_1] : memref<16x1xf32, #tpu.memory_space<vmem>>, vector<16x1xf32>
    %11 = vector.broadcast %10 : vector<16x1xf32> to vector<16x16xf32>
    %12 = vector.broadcast %9 : vector<1x16xf32> to vector<16x16xf32>
    %13 = arith.mulf %11, %12 : vector<16x16xf32>
    %14 = math.sin %13 : vector<16x16xf32>
    %15 = math.cos %13 : vector<16x16xf32>
    %16 = vector.shape_cast %2 : vector<1x16xi1> to vector<1x16xi1>
    %17 = vector.broadcast %16 : vector<1x16xi1> to vector<16x16xi1>
    %18 = arith.select %17, %14, %15 : vector<16x16xi1>, vector<16x16xf32>
    %c0_2 = arith.constant 0 : index
    %c0_3 = arith.constant 0 : index
    %19 = vector.load %arg3[%c0_2, %c0_3] : memref<48x32xbf16, #tpu.memory_space<vmem>>, vector<16x32xbf16>
    %c16 = arith.constant 16 : index
    %c0_4 = arith.constant 0 : index
    %20 = vector.load %arg3[%c16, %c0_4] : memref<48x32xbf16, #tpu.memory_space<vmem>>, vector<32x16xbf16>
    %c0_5 = arith.constant 0 : index
    %c0_6 = arith.constant 0 : index
    %21 = vector.load %arg8[%c0_5, %c0_6] : memref<8x512xf32, #tpu.memory_space<vmem>>, vector<1x32xf32>
    %c1 = arith.constant 1 : index
    %c0_7 = arith.constant 0 : index
    %22 = vector.load %arg8[%c1, %c0_7] : memref<8x512xf32, #tpu.memory_space<vmem>>, vector<1x16xf32>
    %23 = arith.truncf %18 : vector<16x16xf32> to vector<16x16xbf16>
    %cst_8 = arith.constant dense<0.000000e+00> : vector<16x32xf32>
    %24 = tpu.matmul %23, %19, %cst_8 {dimension_numbers = #tpu.dot_dimension_numbers<[1], [0], [0], [1], [0, 0, 1, 1], [], []>} : vector<16x16xbf16>, vector<16x32xbf16>, vector<16x32xf32> -> vector<16x32xf32>
    %25 = vector.broadcast %21 : vector<1x32xf32> to vector<16x32xf32>
    %26 = arith.addf %24, %25 : vector<16x32xf32>
    %cst_9 = arith.constant 2.000000e+01 : f32
    %27 = vector.broadcast %cst_9 : f32 to vector<16x32xf32>
    %28 = arith.minimumf %26, %27 : vector<16x32xf32>
    %29 = math.exp %28 : vector<16x32xf32>
    %cst_10 = arith.constant 2.000000e+00 : f32
    %30 = vector.broadcast %cst_10 : f32 to vector<16x32xf32>
    %31 = arith.addf %29, %30 : vector<16x32xf32>
    %32 = arith.mulf %29, %31 : vector<16x32xf32>
    %33 = arith.mulf %26, %32 : vector<16x32xf32>
    %cst_11 = arith.constant 2.000000e+00 : f32
    %34 = vector.broadcast %cst_11 : f32 to vector<16x32xf32>
    %35 = arith.addf %32, %34 : vector<16x32xf32>
    %36 = tpu.reciprocal %35 {approx = true} : vector<16x32xf32> -> vector<16x32xf32>
    %37 = arith.mulf %33, %36 : vector<16x32xf32>
    %38 = arith.truncf %37 : vector<16x32xf32> to vector<16x32xbf16>
    %cst_12 = arith.constant dense<0.000000e+00> : vector<16x16xf32>
    %39 = tpu.matmul %38, %20, %cst_12 {dimension_numbers = #tpu.dot_dimension_numbers<[1], [0], [0], [1], [0, 0, 1, 1], [], []>} : vector<16x32xbf16>, vector<32x16xbf16>, vector<16x16xf32> -> vector<16x16xf32>
    %40 = vector.broadcast %22 : vector<1x16xf32> to vector<16x16xf32>
    %41 = arith.addf %39, %40 : vector<16x16xf32>
    %c0_13 = arith.constant 0 : index
    %c0_14 = arith.constant 0 : index
    %42 = vector.load %arg1[%c0_13, %c0_14] : memref<16x32xbf16, #tpu.memory_space<vmem>>, vector<16x32xbf16>
    %c0_15 = arith.constant 0 : index
    %c0_16 = arith.constant 0 : index
    %43 = vector.load %arg11[%c0_15, %c0_16] : memref<16x48xbf16, #tpu.memory_space<vmem>>, vector<16x32xbf16>
    tpu.vector_store %arg11[%c0_15, %c0_16], %42 {strides = array<i32>} : memref<16x48xbf16, #tpu.memory_space<vmem>>, vector<16x32xbf16>,
    %44 = arith.truncf %41 : vector<16x16xf32> to vector<16x16xbf16>
    %c0_17 = arith.constant 0 : index
    %c32 = arith.constant 32 : index
    %45 = vector.load %arg11[%c0_17, %c32] : memref<16x48xbf16, #tpu.memory_space<vmem>>, vector<16x16xbf16>
    tpu.vector_store %arg11[%c0_17, %c32], %44 {strides = array<i32>} : memref<16x48xbf16, #tpu.memory_space<vmem>>, vector<16x16xbf16>,
    %c2 = arith.constant 2 : index
    %c0_18 = arith.constant 0 : index
    %46 = vector.load %arg8[%c2, %c0_18] : memref<8x512xf32, #tpu.memory_space<vmem>>, vector<1x512xf32>
    %c3 = arith.constant 3 : index
    %c0_19 = arith.constant 0 : index
    %47 = vector.load %arg8[%c3, %c0_19] : memref<8x512xf32, #tpu.memory_space<vmem>>, vector<1x128xf32>
    %c0_20 = arith.constant 0 : index
    %c0_21 = arith.constant 0 : index
    %48 = vector.load %arg11[%c0_20, %c0_21] : memref<16x48xbf16, #tpu.memory_space<vmem>>, vector<16x48xbf16>
    %c0_22 = arith.constant 0 : index
    %c0_23 = arith.constant 0 : index
    %49 = vector.load %arg4[%c0_22, %c0_23] : memref<48x512xbf16, #tpu.memory_space<vmem>>, vector<48x512xbf16>
    %cst_24 = arith.constant dense<0.000000e+00> : vector<16x512xf32>
    %50 = tpu.matmul %48, %49, %cst_24 {dimension_numbers = #tpu.dot_dimension_numbers<[1], [0], [0], [1], [0, 0, 1, 1], [], []>} : vector<16x48xbf16>, vector<48x512xbf16>, vector<16x512xf32> -> vector<16x512xf32>
    %51 = vector.broadcast %46 : vector<1x512xf32> to vector<16x512xf32>
    %52 = arith.addf %50, %51 : vector<16x512xf32>
    %cst_25 = arith.constant 2.000000e+01 : f32
    %53 = vector.broadcast %cst_25 : f32 to vector<16x512xf32>
    %54 = arith.minimumf %52, %53 : vector<16x512xf32>
    %55 = math.exp %54 : vector<16x512xf32>
    %cst_26 = arith.constant 2.000000e+00 : f32
    %56 = vector.broadcast %cst_26 : f32 to vector<16x512xf32>
    %57 = arith.addf %55, %56 : vector<16x512xf32>
    %58 = arith.mulf %55, %57 : vector<16x512xf32>
    %59 = arith.mulf %52, %58 : vector<16x512xf32>
    %cst_27 = arith.constant 2.000000e+00 : f32
    %60 = vector.broadcast %cst_27 : f32 to vector<16x512xf32>
    %61 = arith.addf %58, %60 : vector<16x512xf32>
    %62 = tpu.reciprocal %61 {approx = true} : vector<16x512xf32> -> vector<16x512xf32>
    %63 = arith.mulf %59, %62 : vector<16x512xf32>
    %64 = arith.truncf %63 : vector<16x512xf32> to vector<16x512xbf16>
    %c0_28 = arith.constant 0 : index
    %c0_29 = arith.constant 0 : index
    %65 = vector.load %arg5[%c0_28, %c0_29] : memref<512x128xbf16, #tpu.memory_space<vmem>>, vector<512x128xbf16>
    %cst_30 = arith.constant dense<0.000000e+00> : vector<16x128xf32>
    %66 = tpu.matmul %64, %65, %cst_30 {dimension_numbers = #tpu.dot_dimension_numbers<[1], [0], [0], [1], [0, 0, 1, 1], [], []>} : vector<16x512xbf16>, vector<512x128xbf16>, vector<16x128xf32> -> vector<16x128xf32>
    %67 = vector.broadcast %47 : vector<1x128xf32> to vector<16x128xf32>
    %68 = arith.addf %66, %67 : vector<16x128xf32>
    %cst_31 = arith.constant 2.000000e+01 : f32
    %69 = vector.broadcast %cst_31 : f32 to vector<16x128xf32>
    %70 = arith.minimumf %68, %69 : vector<16x128xf32>
    %71 = math.exp %70 : vector<16x128xf32>
    %cst_32 = arith.constant 2.000000e+00 : f32
    %72 = vector.broadcast %cst_32 : f32 to vector<16x128xf32>
    %73 = arith.addf %71, %72 : vector<16x128xf32>
    %74 = arith.mulf %71, %73 : vector<16x128xf32>
    %75 = arith.mulf %68, %74 : vector<16x128xf32>
    %cst_33 = arith.constant 2.000000e+00 : f32
    %76 = vector.broadcast %cst_33 : f32 to vector<16x128xf32>
    %77 = arith.addf %74, %76 : vector<16x128xf32>
    %78 = tpu.reciprocal %77 {approx = true} : vector<16x128xf32> -> vector<16x128xf32>
    %79 = arith.mulf %75, %78 : vector<16x128xf32>
    %c0_34 = arith.constant 0 : index
    %c0_35 = arith.constant 0 : index
    %80 = vector.load %arg9[%c0_34, %c0_35] : memref<16x128xf32, #tpu.memory_space<vmem>>, vector<16x128xf32>
    tpu.vector_store %arg9[%c0_34, %c0_35], %79 {strides = array<i32>} : memref<16x128xf32, #tpu.memory_space<vmem>>, vector<16x128xf32>,
    %c4 = arith.constant 4 : index
    %c0_36 = arith.constant 0 : index
    %81 = vector.load %arg8[%c4, %c0_36] : memref<8x512xf32, #tpu.memory_space<vmem>>, vector<1x256xf32>
    %c5 = arith.constant 5 : index
    %c0_37 = arith.constant 0 : index
    %82 = vector.load %arg8[%c5, %c0_37] : memref<8x512xf32, #tpu.memory_space<vmem>>, vector<1x128xf32>
    %83 = arith.truncf %79 : vector<16x128xf32> to vector<16x128xbf16>
    %c0_38 = arith.constant 0 : index
    %c0_39 = arith.constant 0 : index
    %84 = vector.load %arg6[%c0_38, %c0_39] : memref<128x256xbf16, #tpu.memory_space<vmem>>, vector<128x256xbf16>
    %cst_40 = arith.constant dense<0.000000e+00> : vector<16x256xf32>
    %85 = tpu.matmul %83, %84, %cst_40 {dimension_numbers = #tpu.dot_dimension_numbers<[1], [0], [0], [1], [0, 0, 1, 1], [], []>} : vector<16x128xbf16>, vector<128x256xbf16>, vector<16x256xf32> -> vector<16x256xf32>
    %86 = vector.broadcast %81 : vector<1x256xf32> to vector<16x256xf32>
    %87 = arith.addf %85, %86 : vector<16x256xf32>
    %cst_41 = arith.constant 2.000000e+01 : f32
    %88 = vector.broadcast %cst_41 : f32 to vector<16x256xf32>
    %89 = arith.minimumf %87, %88 : vector<16x256xf32>
    %90 = math.exp %89 : vector<16x256xf32>
    %cst_42 = arith.constant 2.000000e+00 : f32
    %91 = vector.broadcast %cst_42 : f32 to vector<16x256xf32>
    %92 = arith.addf %90, %91 : vector<16x256xf32>
    %93 = arith.mulf %90, %92 : vector<16x256xf32>
    %94 = arith.mulf %87, %93 : vector<16x256xf32>
    %cst_43 = arith.constant 2.000000e+00 : f32
    %95 = vector.broadcast %cst_43 : f32 to vector<16x256xf32>
    %96 = arith.addf %93, %95 : vector<16x256xf32>
    %97 = tpu.reciprocal %96 {approx = true} : vector<16x256xf32> -> vector<16x256xf32>
    %98 = arith.mulf %94, %97 : vector<16x256xf32>
    %99 = arith.truncf %98 : vector<16x256xf32> to vector<16x256xbf16>
    %c0_44 = arith.constant 0 : index
    %c0_45 = arith.constant 0 : index
    %100 = vector.load %arg7[%c0_44, %c0_45] : memref<256x128xbf16, #tpu.memory_space<vmem>>, vector<256x128xbf16>
    %cst_46 = arith.constant dense<0.000000e+00> : vector<16x128xf32>
    %101 = tpu.matmul %99, %100, %cst_46 {dimension_numbers = #tpu.dot_dimension_numbers<[1], [0], [0], [1], [0, 0, 1, 1], [], []>} : vector<16x256xbf16>, vector<256x128xbf16>, vector<16x128xf32> -> vector<16x128xf32>
    %102 = vector.broadcast %82 : vector<1x128xf32> to vector<16x128xf32>
    %103 = arith.addf %101, %102 : vector<16x128xf32>
    %cst_47 = arith.constant 0.000000e+00 : f32
    %104 = vector.broadcast %cst_47 : f32 to vector<16x128xf32>
    %105 = arith.maximumf %103, %104 : vector<16x128xf32>
    %c0_48 = arith.constant 0 : index
    %c0_49 = arith.constant 0 : index
    %106 = vector.load %arg10[%c0_48, %c0_49] : memref<16x128xf32, #tpu.memory_space<vmem>>, vector<16x128xf32>
    tpu.vector_store %arg10[%c0_48, %c0_49], %105 {strides = array<i32>} : memref<16x128xf32, #tpu.memory_space<vmem>>, vector<16x128xf32>,
    return
  }
  func.func @transform_0(%arg0: i32) -> (i32, i32) {
    %c0_i32 = arith.constant 0 : i32
    %c0_i32_0 = arith.constant 0 : i32
    return %arg0, %c0_i32 : i32, i32
  }
  func.func @transform_1(%arg0: i32) -> (i32, i32) {
    %c0_i32 = arith.constant 0 : i32
    %c0_i32_0 = arith.constant 0 : i32
    return %arg0, %c0_i32 : i32, i32
  }
  func.func @transform_2(%arg0: i32) -> (i32, i32) {
    %c0_i32 = arith.constant 0 : i32
    %c0_i32_0 = arith.constant 0 : i32
    %c0_i32_1 = arith.constant 0 : i32
    return %c0_i32, %c0_i32_0 : i32, i32
  }
  func.func @transform_3(%arg0: i32) -> (i32, i32) {
    %c0_i32 = arith.constant 0 : i32
    %c0_i32_0 = arith.constant 0 : i32
    %c0_i32_1 = arith.constant 0 : i32
    return %c0_i32, %c0_i32_0 : i32, i32
  }
  func.func @transform_4(%arg0: i32) -> (i32, i32) {
    %c0_i32 = arith.constant 0 : i32
    %c0_i32_0 = arith.constant 0 : i32
    %c0_i32_1 = arith.constant 0 : i32
    return %c0_i32, %c0_i32_0 : i32, i32
  }
  func.func @transform_5(%arg0: i32) -> (i32, i32) {
    %c0_i32 = arith.constant 0 : i32
    %c0_i32_0 = arith.constant 0 : i32
    %c0_i32_1 = arith.constant 0 : i32
    return %c0_i32, %c0_i32_0 : i32, i32
  }
  func.func @transform_6(%arg0: i32) -> (i32, i32) {
    %c0_i32 = arith.constant 0 : i32
    %c0_i32_0 = arith.constant 0 : i32
    %c0_i32_1 = arith.constant 0 : i32
    return %c0_i32, %c0_i32_0 : i32, i32
  }
  func.func @transform_7(%arg0: i32) -> (i32, i32) {
    %c0_i32 = arith.constant 0 : i32
    %c0_i32_0 = arith.constant 0 : i32
    %c0_i32_1 = arith.constant 0 : i32
    return %c0_i32, %c0_i32_0 : i32, i32
  }
  func.func @transform_8(%arg0: i32) -> (i32, i32) {
    %c0_i32 = arith.constant 0 : i32
    %c0_i32_0 = arith.constant 0 : i32
    return %arg0, %c0_i32 : i32, i32
  }
  func.func @transform_9(%arg0: i32) -> (i32, i32) {
    %c0_i32 = arith.constant 0 : i32
    %c0_i32_0 = arith.constant 0 : i32
    return %arg0, %c0_i32 : i32, i32
  }
}

</mosaic_0001>

<bundles_post_ra>
// kernel: tpu_custom_call.1
= control target key start
LH: loop header
LB: loop body
LE: loop exit
PB: predicated region body
PF: predicated region fallthrough
CT: control target
= control target key end

     0   :  { %15 = vsyncpa [#allocation4], 0  ;;  %s2561_s0 = inlined_call_operand.vmem [shape: bf16[16,32], index: 0, kind: input, shape index: {}]   ;;  %s2562_s1 = inlined_call_operand.vmem [shape: f32[16,1], index: 1, kind: input, shape index: {}]   ;;  %s2563_s2 = inlined_call_operand.vmem [shape: bf16[48,32], index: 2, kind: input, shape index: {}]   ;;  %s2564_s3 = inlined_call_operand.hbm [shape: bf16[48,512], index: 3, kind: input, shape index: {}]   ;;  %s2565_s4 = inlined_call_operand.hbm [shape: bf16[512,128], index: 4, kind: input, shape index: {}]   ;;  %s2566_s5 = inlined_call_operand.hbm [shape: bf16[128,256], index: 5, kind: input, shape index: {}]   ;;  %s2567_s6 = inlined_call_operand.hbm [shape: bf16[256,128], index: 6, kind: input, shape index: {}]   ;;  %s2568_s7 = inlined_call_operand.vmem [shape: f32[8,512], index: 7, kind: input, shape index: {}]   ;;  %s2569_s8 = inlined_call_operand.hbm [shape: f32[16,128], index: 8, kind: output, shape index: {0}]   ;;  %s2570_s9 = inlined_call_operand.hbm [shape: f32[16,128], index: 9, kind: output, shape index: {1}]  }
   0x1   :  { %16 = vsyncpa [#allocation7], 0 }
   0x2   :  { %17 = vsyncpa [#allocation10], 0 }
   0x3   :  { %18 = vsyncpa [#allocation5], 0 }
   0x4   :  { %19 = vsyncpa [#allocation13], 0  ;;  %s2232_s30 = smov [#allocation6]   ;;  %s2090_s13 = scalar_lea.hbm %s2565_s4, 4096 }
   0x5   :  { %s43_s10 = sshll.u32 %s2232_s30, 4  ;;  %p2091_p0 = scmp.ne.s32.totalorder %s2565_s4, %s2090_s13  ;;  %s44_s10 = int_to_ptr.vmem [resolvable:$true] %s43_s10 }
   0x6   :  { %p2094_p1 = scmp.lt.u32.totalorder %s2090_s13, %s2565_s4 }
   0x8   :  { %p2096_p2 = pnand %p2094_p1, %p2091_p0 }
   0xa   :  { %2099 = shalt.err (!%p2096_p2)
}
   0xb   :  { %s2100_s18 = scalar_lea.vmem %s44_s10, 4096  ;;  %p2105_p4 = scmp.lt.s32.totalorder %s44_s10, %s44_s10 }
   0xc   :  { %p2101_p3 = scmp.ne.s32.totalorder %s44_s10, %s2100_s18  ;;  %p2106_p5 = scmp.lt.s32.totalorder %s2100_s18, %s2100_s18 }
   0xe   :  { %p2107_p6 = por %p2106_p5, %p2105_p4 }
  0x10   :  { %p2108_p7 = pnand %p2107_p6, %p2101_p3 }
  0x12   :  { %2111 = shalt.err (!%p2108_p7)
}
  0x13   :  { %s2233_s19 = smov 64   ;;  %s2234_s20 = smov 4  }
  0x14   :  { %49 = dma.hbm_to_vmem [thread:$0]  %s2565_s4, 4096, %s44_s10, [#allocation7], %s2233_s19, %s2233_s19, %s2234_s20  }
  0x15   :  { %s2235_s23 = smov [#allocation3]   ;;  %s2112_s27 = scalar_lea.hbm %s2564_s3, 1536 }
  0x16   :  { %s31_s24 = sshll.u32 %s2235_s23, 4  ;;  %p2113_p8 = scmp.ne.s32.totalorder %s2564_s3, %s2112_s27  ;;  %s32_s24 = int_to_ptr.vmem [resolvable:$true] %s31_s24 }
  0x17   :  { %p2116_p9 = scmp.lt.u32.totalorder %s2112_s27, %s2564_s3 }
  0x19   :  { %p2118_p10 = pnand %p2116_p9, %p2113_p8 }
  0x1b   :  { %2121 = shalt.err (!%p2118_p10)
}
  0x1c   :  { %s2122_s12 = scalar_lea.vmem %s32_s24, 1536  ;;  %p2127_p12 = scmp.lt.s32.totalorder %s32_s24, %s32_s24 }
  0x1d   :  { %p2123_p11 = scmp.ne.s32.totalorder %s32_s24, %s2122_s12  ;;  %p2128_p13 = scmp.lt.s32.totalorder %s2122_s12, %s2122_s12 }
  0x1f   :  { %p2129_p0 = por %p2128_p13, %p2127_p12 }
  0x21   :  { %p2130_p1 = pnand %p2129_p0, %p2123_p11 }
  0x23   :  { %2133 = shalt.err (!%p2130_p1)
}
  0x24   :  { %s2236_s4 = smov 256   ;;  %s2237_s10 = smov 16  }
  0x25   :  { %37 = dma.hbm_to_vmem [thread:$0]  %s2564_s3, 1536, %s32_s24, [#allocation4], %s2236_s4, %s2236_s4, %s2237_s10  }
  0x26   :  { %s2238_s15 = smov [#allocation8]   ;;  %s2134_s21 = scalar_lea.hbm %s2566_s5, 2048 }
  0x27   :  { %s55_s16 = sshll.u32 %s2238_s15, 4  ;;  %p2135_p2 = scmp.ne.s32.totalorder %s2566_s5, %s2134_s21  ;;  %s56_s16 = int_to_ptr.vmem [resolvable:$true] %s55_s16 }
  0x28   :  { %p2138_p3 = scmp.lt.u32.totalorder %s2134_s21, %s2566_s5 }
  0x2a   :  { %p2140_p4 = pnand %p2138_p3, %p2135_p2 }
  0x2c   :  { %2143 = shalt.err (!%p2140_p4)
}
  0x2d   :  { %s2144_s27 = scalar_lea.vmem %s56_s16, 2048  ;;  %p2149_p6 = scmp.lt.s32.totalorder %s56_s16, %s56_s16 }
  0x2e   :  { %p2145_p5 = scmp.ne.s32.totalorder %s56_s16, %s2144_s27  ;;  %p2150_p7 = scmp.lt.s32.totalorder %s2144_s27, %s2144_s27 }
  0x30   :  { %p2151_p8 = por %p2150_p7, %p2149_p6 }
  0x32   :  { %p2152_p9 = pnand %p2151_p8, %p2145_p5 }
  0x34   :  { %2155 = shalt.err (!%p2152_p9)
}
  0x35   :  { %s2239_s3 = smov 128   ;;  %s2240_s24 = smov 8  }
  0x36   :  { %61 = dma.hbm_to_vmem [thread:$0]  %s2566_s5, 2048, %s56_s16, [#allocation7], %s2239_s3, %s2239_s3, %s2240_s24  }
  0x37   :  { %s2241_s30 = smov [#allocation9]   ;;  %s2156_s10 = scalar_lea.hbm %s2567_s6, 2048 }
  0x38   :  { %s67_s11 = sshll.u32 %s2241_s30, 4  ;;  %p2157_p10 = scmp.ne.s32.totalorder %s2567_s6, %s2156_s10  ;;  %s68_s11 = int_to_ptr.vmem [resolvable:$true] %s67_s11 }
  0x39   :  { %p2160_p11 = scmp.lt.u32.totalorder %s2156_s10, %s2567_s6 }
  0x3b   :  { %p2162_p12 = pnand %p2160_p11, %p2157_p10 }
  0x3d   :  { %2165 = shalt.err (!%p2162_p12)
}
  0x3e   :  { %s2166_s18 = scalar_lea.vmem %s68_s11, 2048  ;;  %p2171_p0 = scmp.lt.s32.totalorder %s68_s11, %s68_s11 }
  0x3f   :  { %p2167_p13 = scmp.ne.s32.totalorder %s68_s11, %s2166_s18  ;;  %p2172_p1 = scmp.lt.s32.totalorder %s2166_s18, %s2166_s18 }
  0x41   :  { %p2173_p2 = por %p2172_p1, %p2171_p0 }
  0x43   :  { %p2174_p3 = pnand %p2173_p2, %p2167_p13 }
  0x45   :  { %2177 = shalt.err (!%p2174_p3)
}
  0x46   :  { %73 = dma.hbm_to_vmem [thread:$0]  %s2567_s6, 2048, %s68_s11, [#allocation10], %s2233_s19, %s2233_s19, %s2234_s20  }
  0x47   :  { %2222 = dma.done.wait [#allocation4], 1536  }
  0x48   :  { %2223 = vsyncadd [#allocation4], 4294965760 }
  0x49   :  { %2224 = dma.done.wait [#allocation7], 6144  }
  0x4a   :  { %2225 = vsyncadd [#allocation7], 4294961152 }
  0x4b   :  { %2226 = dma.done.wait [#allocation10], 2048  }
  0x4c   :  { %2227 = vsyncadd [#allocation10], 4294965248  ;;  %v2242_v0 = vmov 0   ;;  %v98_v1 = vld [vmem:[%s2562_s1] sm:$0xff]  ;;  %v99_v2 = vld [vmem:[%s2562_s1 + $0x8] sm:$0xff]  ;;  %v2243_v4 = vmov 0.0   ;;  %v89_v5 = vlaneseq }
  0x4d   :  { %1921 = vset.pattern.permute.xlu0 %v2242_v0  ;;  %v1922_v3 = vld [vmem:[%s2563_s2] sm:$0xff]   ;;  %1877 = vmatprep.subr.bf16.mxu0 %v2243_v4  ;;  %vm2244_vm0 = vmmov 0   ;;  %v2245_v33 = vmov 683565275   ;;  %v2246_v37 = vmov 2475754826  }
  0x4e   :  { %102 = vperm.xlu0 %1921, %v98_v1   ;;  %1879 = vmatprep.mubr.msk.bf16.mxu0 %vm2244_vm0, %v2243_v4  ;;  %v2376_v6 = vand.u32 127, %v89_v5  ;;  %v2247_v39 = vmov 2131351028   ;;  %v2248_v41 = vmov 2102212464   ;;  %s2251_s12 = smov 32  }
  0x4f   :  { %1878 = vmatpush3.bf16.msra.mxu0 %v1922_v3  ;;  %1883 = vmatprep.subr.bf16.mxu1 %v2243_v4  ;;  %v2249_v43 = vmov 920167782   ;;  %v2250_v50 = vmov 1326507024   ;;  %s2252_s18 = smov [#allocation11]  }
  0x50   :  { %1887 = vmatprep.mubr.msk.bf16.mxu1 %vm2244_vm0, %v2243_v4  ;;  %v1703_v7 = vadd.s32 4294967288, %v2376_v6  ;;  %vm91_vm1 = vcmp.lt.s32.totalorder %v2376_v6, 8  ;;  %s1673_s5 = sshll.u32 %s2252_s18, 4  ;;  %s1674_s5 = int_to_ptr.vmem [resolvable:$true] %s1673_s5 }
  0x51   :  { %s2178_s16 = scalar_lea.vmem %s1674_s5, 256  ;;  %p2183_p5 = scmp.lt.s32.totalorder %s1674_s5, %s1674_s5 }
  0x52   :  { %107 = vperm.xlu0 %1921, %v99_v2   ;;  %v93_v8 = vsel %vm91_vm1, %v2376_v6, %v1703_v7  ;;  %v1925_v6 = vld [vmem:[%s2561_s0] sm:$0xff]   ;;  %p2179_p4 = scmp.ne.s32.totalorder %s1674_s5, %s2178_s16  ;;  %p2184_p6 = scmp.lt.s32.totalorder %s2178_s16, %s2178_s16 }
  0x53   :  { %v94_v9 = vcvt.s32.f32 %v93_v8 }
  0x54   :  { %p2185_p7 = por %p2184_p6, %p2183_p5 }
  0x55   :  { %v95_v10 = vmul.f32 -1.3157629, %v94_v9 }
  0x56   :  { %p2186_p8 = pnand %p2185_p7, %p2179_p4 }
  0x57   :  { %v96_v11 = vmul.f32 1.442695, %v95_v10 }
  0x59   :  { %2016 = vpow2.f32 %v96_v11 }
  0x63   :  { %v2017_v12 = vpop.eup %2016 }
  0xcd   :  { %v103_v13 = vpop.permute.xlu0 %102 }
  0xce   :  { %v2383_v14 = vmul.f32 %v2017_v12, %v103_v13 }
  0xd0   :  { %v112_v15 = vand.u32 2147483647, %v2383_v14  ;;  %v115_v16 = vand.u32 2139095040, %v2383_v14  ;;  %vm114_vm0 = vcmp.lt.s32.totalorder %v2383_v14, 0 }
  0xd1   :  { %v108_v17 = vpop.permute.xlu0 %107 }
  0xd2   :  { %v116_v18 = vshrl.u32 %v115_v16, 23  ;;  %v2387_v19 = vmul.f32 %v2017_v12, %v108_v17  ;;  %v119_v20 = vand.u32 8388607, %v112_v15 }
  0xd4   :  { %v1704_v21 = vadd.s32 4294967169, %v116_v18  ;;  %v219_v22 = vand.u32 2139095040, %v2387_v19  ;;  %v120_v24 = vor.u32 8388608, %v119_v20  ;;  %v216_v26 = vand.u32 2147483647, %v2387_v19 }
  0xd6   :  { %v122_v23 = vadd.s32 1, %v1704_v21  ;;  %v220_v25 = vshrl.u32 %v219_v22, 23  ;;  %v2393_v31 = vshll.u32 %v120_v24, 8  ;;  %v223_v35 = vand.u32 8388607, %v216_v26 }
  0xd8   :  { %vm123_vm2 = vcmp.gt.s32.totalorder %v122_v23, 0  ;;  %v1708_v28 = vadd.s32 4294967169, %v220_v25  ;;  %v224_v2 = vor.u32 8388608, %v223_v35 }
  0xd9   :  { %v124_v27 = vsel %vm123_vm2, %v122_v23, 0  ;;  %vm113_vm2 = vcmp.le.f32.partialorder %v112_v15, 0.7853982 }
  0xda   :  { %v125_v29 = vshrl.u32 %v124_v27, 5  ;;  %v126_v30 = vand.u32 31, %v124_v27  ;;  %v226_v36 = vadd.s32 1, %v1708_v28  ;;  %v264_v21 = vshll.u32 %v224_v2, 8 }
  0xdc   :  { %v127_v32 = vsub.s32 32, %v126_v30  ;;  %v129_v34 = vshll.u32 %v2245_v33, %v126_v30  ;;  %v132_v38 = vshll.u32 %v2246_v37, %v126_v30  ;;  %v135_v40 = vshll.u32 %v2247_v39, %v126_v30 }
  0xdd   :  { %v138_v42 = vshll.u32 %v2248_v41, %v126_v30  ;;  %v141_v44 = vshll.u32 %v2249_v43, %v126_v30  ;;  %vm144_vm3 = vcmp.lt.s32.totalorder %v125_v29, 1  ;;  %vm146_vm4 = vcmp.lt.s32.totalorder %v125_v29, 3 }
  0xde   :  { %v130_v45 = vshrl.u32 %v2246_v37, %v127_v32  ;;  %v133_v46 = vshrl.u32 %v2247_v39, %v127_v32  ;;  %v136_v47 = vshrl.u32 %v2248_v41, %v127_v32  ;;  %v128_v48 = vshrl.u32 %v2245_v33, %v127_v32 }
  0xdf   :  { %v139_v49 = vshrl.u32 %v2249_v43, %v127_v32  ;;  %v142_v51 = vshrl.u32 %v2250_v50, %v127_v32  ;;  %vm227_vm5 = vcmp.gt.s32.totalorder %v226_v36, 0  ;;  %vm147_vm6 = vcmp.lt.s32.totalorder %v125_v29, 4 }
  0xe0   :  { %v131_v52 = vor.u32 %v130_v45, %v129_v34  ;;  %v134_v53 = vor.u32 %v133_v46, %v132_v38  ;;  %v137_v54 = vor.u32 %v136_v47, %v135_v40  ;;  %v228_v57 = vsel %vm227_vm5, %v226_v36, 0 }
  0xe1   :  { %v140_v55 = vor.u32 %v139_v49, %v138_v42  ;;  %v143_v56 = vor.u32 %v142_v51, %v141_v44  ;;  %vm145_vm7 = vcmp.lt.s32.totalorder %v125_v29, 2  ;;  %v230_v8 = vand.u32 31, %v228_v57 }
  0xe2   :  { %v148_v58 = vsel %vm144_vm3, %v128_v48, %v131_v52  ;;  %v149_v59 = vsel %vm147_vm6, %v137_v54, 2102212464  ;;  %v152_v60 = vsel %vm144_vm3, %v131_v52, %v134_v53  ;;  %v156_v61 = vsel %vm144_vm3, %v134_v53, %v137_v54 }
  0xe3   :  { %v150_v62 = vsel %vm146_vm4, %v134_v53, %v149_v59  ;;  %v153_v63 = vsel %vm147_vm6, %v140_v55, 920167782  ;;  %v157_v1 = vsel %vm147_vm6, %v143_v56, 1326507024  ;;  %v229_v18 = vshrl.u32 %v228_v57, 5 }
  0xe4   :  { %v154_v3 = vsel %vm146_vm4, %v137_v54, %v153_v63  ;;  %v158_v7 = vsel %vm146_vm4, %v140_v55, %v157_v1  ;;  %v151_v9 = vsel %vm145_vm7, %v148_v58, %v150_v62  ;;  %v231_v20 = vsub.s32 32, %v230_v8 }
  0xe5   :  { %v155_v10 = vsel %vm145_vm7, %v152_v60, %v154_v3  ;;  %v159_v11 = vsel %vm145_vm7, %v156_v61, %v158_v7  ;;  %v167_v22 = vmul.u32 %v2393_v31, %v151_v9  ;;  %v233_v23 = vshll.u32 %v2245_v33, %v230_v8 }
  0xe6   :  { %v2406_v12 = vmul.u32.u64.low %v2393_v31, %v159_v11  ;;  %v2407_v13 = vmul.u32.u64.high %v2393_v31, %v159_v11, %v2406_v12  ;;  %v2410_v16 = vmul.u32.u64.low %v2393_v31, %v155_v10  ;;  %v2411_v17 = vmul.u32.u64.high %v2393_v31, %v155_v10, %v2410_v16 }
  0xe7   :  { %v236_v24 = vshll.u32 %v2246_v37, %v230_v8  ;;  %v239_v25 = vshll.u32 %v2247_v39, %v230_v8  ;;  %v234_v27 = vshrl.u32 %v2246_v37, %v231_v20  ;;  %v237_v28 = vshrl.u32 %v2247_v39, %v231_v20 }
  0xe8   :  { %v240_v29 = vshrl.u32 %v2248_v41, %v231_v20  ;;  %v242_v30 = vshll.u32 %v2248_v41, %v230_v8  ;;  %vm169_vm8 = vc.u32 %v2407_v13, %v2410_v16  ;;  %v170_v32 = vadd.s32 1, %v2411_v17 }
  0xe9   :  { %v243_v34 = vshrl.u32 %v2249_v43, %v231_v20  ;;  %v245_v35 = vshll.u32 %v2249_v43, %v230_v8  ;;  %v235_v36 = vor.u32 %v234_v27, %v233_v23  ;;  %v238_v38 = vor.u32 %v237_v28, %v236_v24 }
  0xea   :  { %v241_v40 = vor.u32 %v240_v29, %v239_v25  ;;  %v246_v42 = vshrl.u32 %v2250_v50, %v231_v20  ;;  %v171_v31 = vsel %vm169_vm8, %v170_v32, %v2411_v17  ;;  %vm248_vm9 = vcmp.lt.s32.totalorder %v229_v18, 1 }
  0xeb   :  { %v244_v44 = vor.u32 %v243_v34, %v242_v30  ;;  %vm251_vm10 = vcmp.lt.s32.totalorder %v229_v18, 4  ;;  %v172_v37 = vadd.s32 %v171_v31, %v167_v22  ;;  %vm250_vm11 = vcmp.lt.s32.totalorder %v229_v18, 3 }
  0xec   :  { %v247_v39 = vor.u32 %v246_v42, %v245_v35  ;;  %v253_v41 = vsel %vm251_vm10, %v241_v40, 2102212464  ;;  %v232_v45 = vshrl.u32 %v2245_v33, %v231_v20  ;;  %v256_v46 = vsel %vm248_vm9, %v235_v36, %v238_v38 }
  0xed   :  { %v257_v47 = vsel %vm251_vm10, %v244_v44, 920167782  ;;  %v260_v48 = vsel %vm248_vm9, %v238_v38, %v241_v40  ;;  %v173_v49 = vadd.s32 536870912, %v172_v37  ;;  %vm249_vm12 = vcmp.lt.s32.totalorder %v229_v18, 2 }
  0xee   :  { %v258_v43 = vsel %vm250_vm11, %v241_v40, %v257_v47  ;;  %v261_v51 = vsel %vm251_vm10, %v247_v39, 1326507024  ;;  %v252_v52 = vsel %vm248_vm9, %v232_v45, %v235_v36  ;;  %v254_v50 = vsel %vm250_vm11, %v238_v38, %v253_v41 }
  0xef   :  { %v259_v53 = vsel %vm249_vm12, %v256_v46, %v258_v43  ;;  %v262_v54 = vsel %vm250_vm11, %v244_v44, %v261_v51  ;;  %v174_v55 = vshrl.u32 %v173_v49, 30  ;;  %v255_v61 = vsel %vm249_vm12, %v252_v52, %v254_v50 }
  0xf0   :  { %v263_v56 = vsel %vm249_vm12, %v260_v48, %v262_v54  ;;  %v2421_v57 = vmul.u32.u64.low %v264_v21, %v259_v53  ;;  %v2422_v58 = vmul.u32.u64.high %v264_v21, %v259_v53, %v2421_v57  ;;  %v271_v1 = vmul.u32 %v264_v21, %v255_v61 }
  0xf1   :  { %v2424_v59 = vmul.u32.u64.low %v264_v21, %v263_v56  ;;  %v2425_v60 = vmul.u32.u64.high %v264_v21, %v263_v56, %v2424_v59  ;;  %v175_v33 = vshll.u32 %v174_v55, 30  ;;  %v168_v22 = vadd.s32 %v2410_v16, %v2407_v13 }
  0xf2   :  { %v274_v63 = vadd.s32 1, %v2422_v58  ;;  %v198_v43 = vsub.s32 4, %v174_v55  ;;  %vm218_vm3 = vcmp.lt.s32.totalorder %v2387_v19, 0  ;;  %vm217_vm4 = vcmp.le.f32.partialorder %v216_v26, 0.7853982 }
  0xf3   :  { %v176_v62 = vsub.s32 %v172_v37, %v175_v33  ;;  %vm273_vm13 = vc.u32 %v2425_v60, %v2421_v57  ;;  %v272_v44 = vadd.s32 %v2421_v57, %v2425_v60  ;;  %vm204_vm9 = vweird.f32 %v2383_v14 }
  0xf4   :  { %v275_v3 = vsel %vm273_vm13, %v274_v63, %v2422_v58  ;;  %v199_v53 = vsel %vm114_vm0, %v198_v43, %v174_v55 }
  0xf5   :  { %v178_v2 = vsub.s32 0, %v176_v62  ;;  %v276_v7 = vadd.s32 %v275_v3, %v271_v1  ;;  %v201_v57 = vsel %vm113_vm2, 0, %v199_v53 }
  0xf6   :  { %v205_v60 = vadd.s32 3, %v201_v57  ;;  %v413_v55 = vand.u32 3, %v201_v57 }
  0xf7   :  { %v1705_v8 = vmin.u32 %v178_v2, %v176_v62  ;;  %v277_v9 = vadd.s32 536870912, %v276_v7 }
  0xf8   :  { %v206_v1 = vand.u32 3, %v205_v60  ;;  %vm415_vm5 = vcmp.eq.s32.totalorder %v413_v55, 0  ;;  %vm418_vm6 = vcmp.eq.s32.totalorder %v413_v55, 2  ;;  %vm414_vm11 = vcmp.lt.s32.totalorder %v413_v55, 2  ;;  %v1931_v55 = vld [vmem:[#allocation3 + $0xc] ss:$16 sps:$4 sm:$0xff]  }
  0xf9   :  { %v180_v10 = vclz %v1705_v8  ;;  %v278_v11 = vshrl.u32 %v277_v9, 30 }
  0xfa   :  { %vm208_vm7 = vcmp.eq.s32.totalorder %v206_v1, 0  ;;  %vm211_vm8 = vcmp.eq.s32.totalorder %v206_v1, 2  ;;  %vm207_vm10 = vcmp.lt.s32.totalorder %v206_v1, 2  ;;  %v1932_v1 = vld [vmem:[#allocation3 + $0x20] ss:$16 sps:$4 sm:$0xff]  }
  0xfb   :  { %v1706_v12 = vadd.s32 4294967294, %v180_v10  ;;  %v279_v17 = vshll.u32 %v278_v11, 30  ;;  %v302_v54 = vsub.s32 4, %v278_v11 }
  0xfd   :  { %vm1707_vm14 = vcmp.lt.s32.totalorder %v1706_v12, 0  ;;  %v280_v20 = vsub.s32 %v276_v7, %v279_v17  ;;  %v303_v59 = vsel %vm218_vm3, %v302_v54, %v278_v11 }
  0xfe   :  { %v183_v18 = vsel %vm1707_vm14, 0, %v1706_v12 }
  0xff   :  { %v184_v23 = vsub.s32 32, %v183_v18  ;;  %v188_v21 = vsub.s32 4294967266, %v183_v18  ;;  %v282_v24 = vsub.s32 0, %v280_v20  ;;  %v185_v25 = vshll.u32 %v176_v62, %v183_v18 }
 0x100   :  { %v305_v62 = vsel %vm217_vm4, 0, %v303_v59 }
 0x101   :  { %v186_v27 = vshrl.u32 %v168_v22, %v184_v23  ;;  %v189_v28 = vadd.s32 127, %v188_v21  ;;  %v1709_v29 = vmin.u32 %v282_v24, %v280_v20  ;;  %v309_v2 = vadd.s32 3, %v305_v62 }
 0x102   :  { %v516_v9 = vand.u32 3, %v305_v62  ;;  %v1928_v62 = vld [vmem:[#allocation3 + $0x4] ss:$16 sps:$4 sm:$0xff]  }
 0x103   :  { %v187_v30 = vor.u32 %v186_v27, %v185_v25  ;;  %v190_v32 = vshll.u32 %v189_v28, 23  ;;  %v284_v34 = vclz %v1709_v29  ;;  %v310_v8 = vand.u32 3, %v309_v2  ;;  %783 = vmatprep.subr.bf16.mxu0 %v1928_v62  ;;  %v1934_v2 = vld [vmem:[#allocation3 + $0x24] ss:$16 sps:$4 sm:$0xff]  }
 0x104   :  { %vm517_vm12 = vcmp.lt.s32.totalorder %v516_v9, 2  ;;  %vm518_vm14 = vcmp.eq.s32.totalorder %v516_v9, 0 }
 0x105   :  { %v191_v35 = vor.u32 4788187, %v190_v32  ;;  %v1710_v36 = vadd.s32 4294967294, %v284_v34  ;;  %v194_v40 = vcvt.s32.f32 %v187_v30  ;;  %vm315_vm13 = vcmp.eq.s32.totalorder %v310_v8, 2 }
 0x107   :  { %v192_v38 = vand.u32 2147483647, %v191_v35  ;;  %vm1711_vm15 = vcmp.lt.s32.totalorder %v1710_v36, 0 }
 0x108   :  { %v287_v31 = vsel %vm1711_vm15, 0, %v1710_v36  ;;  %vm521_vm15 = vcmp.eq.s32.totalorder %v516_v9, 2  ;;  %v1943_v9 = vld [vmem:[#allocation3 + $0x4c] ss:$16 sps:$4 sm:$0xff]  }
 0x109   :  { %v195_v42 = vmul.f32 %v194_v40, %v192_v38  ;;  %v288_v13 = vsub.s32 32, %v287_v31  ;;  %v292_v16 = vsub.s32 4294967266, %v287_v31  ;;  %v289_v39 = vshll.u32 %v280_v20, %v287_v31  ;;  %v536_v31 = vld [vmem:[%s2568_s7] ss:$0 sm:$0xff] }
 0x10b   :  { %v196_v37 = vxor.u32 2147483648, %v195_v42  ;;  %v290_v41 = vshrl.u32 %v272_v44, %v288_v13  ;;  %v293_v45 = vadd.s32 127, %v292_v16 }
 0x10d   :  { %v197_v46 = vsel %vm114_vm0, %v196_v37, %v195_v42  ;;  %v291_v48 = vor.u32 %v290_v41, %v289_v39  ;;  %v294_v49 = vshll.u32 %v293_v45, 23  ;;  %vm311_vm0 = vcmp.lt.s32.totalorder %v310_v8, 2 }
 0x10e   :  { %v200_v47 = vsel %vm113_vm2, %v2383_v14, %v197_v46  ;;  %vm312_vm2 = vcmp.eq.s32.totalorder %v310_v8, 0  ;;  %v1923_v14 = vld [vmem:[%s2563_s2 + $0x8] sm:$0xff]  }
 0x10f   :  { %2018 = vcosq.f32 %v200_v47  ;;  %v295_v51 = vor.u32 4788187, %v294_v49  ;;  %v298_v50 = vcvt.s32.f32 %v291_v48  ;;  %1884 = vmatpush3.bf16.msra.mxu1 %v1923_v14  ;;  %v1940_v8 = vld [vmem:[#allocation3 + $0x44] ss:$16 sps:$4 sm:$0xff]  }
 0x110   :  { %2020 = vsinq.f32 %v200_v47  ;;  %1885 = vmatprep.subr.bf16.mxu1 %v2243_v4  ;;  %v1955_v14 = vld [vmem:[#allocation6 + $0x90] sm:$0xff]  }
 0x111   :  { %v296_v52 = vand.u32 2147483647, %v295_v51 }
 0x113   :  { %v299_v56 = vmul.f32 %v298_v50, %v296_v52 }
 0x115   :  { %v300_v58 = vxor.u32 2147483648, %v299_v56 }
 0x117   :  { %v301_v15 = vsel %vm218_vm3, %v300_v58, %v299_v56  ;;  %vm308_vm3 = vweird.f32 %v2387_v19 }
 0x118   :  { %v304_v33 = vsel %vm217_vm4, %v2387_v19, %v301_v15  ;;  %vm545_vm4 = vcmask 130048   ;;  %v1924_v19 = vld [vmem:[%s2563_s2 + $0x10] sm:$0xff]  }
 0x119   :  { %v2019_v61 = vpop.eup %2018  ;;  %2022 = vcosq.f32 %v304_v33  ;;  %1886 = vmatpush3.bf16.msra.mxu1 %v1924_v19  ;;  %v1956_v19 = vld [vmem:[#allocation6 + $0x58] sm:$0xff]  }
 0x11a   :  { %v2021_v63 = vpop.eup %2020  ;;  %2024 = vsinq.f32 %v304_v33  ;;  %v212_v7 = vxor.u32 2147483648, %v2019_v61  ;;  %826 = vmatprep.subr.bf16.mxu1 %v1931_v55 }
 0x11b   :  { %v209_v3 = vxor.u32 2147483648, %v2021_v63 }
 0x11c   :  { %v213_v10 = vsel %vm211_vm8, %v212_v7, %v2021_v63  ;;  %v420_v12 = vsel %vm418_vm6, %v212_v7, %v2021_v63  ;;  %v1929_v63 = vld [vmem:[#allocation3 + $0x8] ss:$16 sps:$4 sm:$0xff]   ;;  %v1937_v7 = vld [vmem:[#allocation3 + $0x2c] ss:$16 sps:$4 sm:$0xff]   ;;  %vm779_vm6 = vcmask 392192  }
 0x11d   :  { %v210_v26 = vsel %vm208_vm7, %v2019_v61, %v209_v3  ;;  %v417_v11 = vsel %vm415_vm5, %v2019_v61, %v209_v3  ;;  %v1926_v61 = vld [vmem:[#allocation3] ss:$16 sps:$4 sm:$0xff]   ;;  %v1935_v3 = vld [vmem:[#allocation3 + $0x28] ss:$16 sps:$4 sm:$0xff]   ;;  %vm680_vm5 = vcmask 392448  }
 0x11e   :  { %v214_v20 = vsel %vm207_vm10, %v210_v26, %v213_v10  ;;  %v421_v23 = vsel %vm414_vm11, %v417_v11, %v420_v12  ;;  %v1938_v26 = vld [vmem:[#allocation3 + $0x40] ss:$16 sps:$4 sm:$0xff]   ;;  %v1941_v10 = vld [vmem:[#allocation3 + $0x48] ss:$16 sps:$4 sm:$0xff]  }
 0x11f   :  { %v215_v27 = vsel %vm204_vm9, nan, %v214_v20  ;;  %v422_v29 = vsel %vm204_vm9, nan, %v421_v23  ;;  %v537_v11 = vld [vmem:[%s2568_s7 + $0x1] ss:$0 sm:$0xff] }
 0x120   :  { %v528_v38 = vsel %vm91_vm1, %v215_v27, %v422_v29  ;;  %v1944_v27 = vld [vmem:[#allocation6 + $0x40] sm:$0xff]  }
 0x121   :  { %v1946_v29 = vld [vmem:[#allocation6] sm:$0xff]  }
 0x123   :  { %v2023_v17 = vpop.eup %2022 }
 0x124   :  { %v2025_v18 = vpop.eup %2024  ;;  %v316_v22 = vxor.u32 2147483648, %v2023_v17 }
 0x125   :  { %v313_v21 = vxor.u32 2147483648, %v2025_v18 }
 0x126   :  { %v317_v24 = vsel %vm315_vm13, %v316_v22, %v2025_v18  ;;  %v523_v25 = vsel %vm521_vm15, %v316_v22, %v2025_v18 }
 0x127   :  { %v314_v28 = vsel %vm312_vm2, %v2023_v17, %v313_v21  ;;  %v520_v30 = vsel %vm518_vm14, %v2023_v17, %v313_v21 }
 0x128   :  { %v318_v32 = vsel %vm311_vm0, %v314_v28, %v317_v24  ;;  %v524_v34 = vsel %vm517_vm12, %v520_v30, %v523_v25  ;;  %v1945_v28 = vld [vmem:[#allocation6 + $0xc0] sm:$0xff]  }
 0x129   :  { %v319_v35 = vsel %vm308_vm3, nan, %v318_v32  ;;  %v525_v36 = vsel %vm308_vm3, nan, %v524_v34  ;;  %v1947_v30 = vld [vmem:[#allocation6 + $0x80] sm:$0xff]   ;;  %v1948_v32 = vld [vmem:[#allocation6 + $0x48] sm:$0xff]  }
 0x12a   :  { %v529_v40 = vsel %vm91_vm1, %v319_v35, %v525_v36  ;;  %vm621_vm1 = vcmask 261120   ;;  %v1949_v34 = vld [vmem:[#allocation6 + $0xc8] sm:$0xff]  }
 0x12b   :  { %v538_v42 = vpack.c.bf16 %v529_v40, %v528_v38  ;;  %674 = vst.msk [vmem:[#allocation2] sm:$0xff] %vm621_vm1, %v1925_v6  ;;  %v1950_v35 = vld [vmem:[#allocation6 + $0x8] sm:$0xff]   ;;  %v1952_v38 = vld [vmem:[#allocation6 + $0x50] sm:$0xff]   ;;  %v1957_v6 = vld [vmem:[#allocation6 + $0xd8] sm:$0xff]  }
 0x12c   :  { %v1951_v36 = vld [vmem:[#allocation6 + $0x88] sm:$0xff]   ;;  %v1953_v40 = vld [vmem:[#allocation6 + $0xd0] sm:$0xff]  }
 0x12d   :  { %1880 = vmatmul.mubr.msk.bf16.vlgmr.msra.gmra.mrb[0].mxu0 %vm545_vm4, %v538_v42  ;;  %v1954_v42 = vld [vmem:[#allocation6 + $0x10] sm:$0xff]  }
 0x12e   :  { %815 = vmatprep.mubr.bf16.mxu0 %v2242_v0  ;;  %784 = vmatpush1.bf16.msra.mxu0 %v1926_v61 }
 0x12f   :  { %785 = vmatprep.subr.bf16.mxu0 %v1934_v2 }
 0x132   :  { %786 = vmatpush1.bf16.msra.mxu0 %v1932_v1 }
 0x133   :  { %787 = vmatprep.subr.bf16.mxu0 %v1940_v8 }
 0x136   :  { %788 = vmatpush1.bf16.msra.mxu0 %v1938_v26 }
 0x137   :  { %1811 = vmatprep.subr.bf16.mxu0 %v1944_v27 }
 0x200   :  { %v583_v44 = vpop.f32.mrb[0].mxu0 }
 0x201   :  { %v584_v13 = vadd.f32 %v583_v44, %v536_v31  ;;  %v1881_v16 = vpop.f32.mrb[1].mxu0  ;;  %v1959_v44 = vld [vmem:[#allocation6 + $0x98] sm:$0xff]  }
 0x202   :  { %v586_v4 = vpop.f32.mrb[2].mxu0  ;;  %v1961_v16 = vld [vmem:[#allocation6 + $0xe0] sm:$0xff]  }
 0x203   :  { %v590_v37 = vmin.f32 %v584_v13, 20.0  ;;  %v587_v39 = vadd.f32 %v586_v4, %v536_v31  ;;  %v1882_v41 = vpop.f32.mrb[3].mxu0  ;;  %v1958_v31 = vld [vmem:[#allocation6 + $0x18] sm:$0xff]   ;;  %v1962_v4 = vld [vmem:[#allocation6 + $0x20] sm:$0xff]  }
 0x204   :  { %v1965_v41 = vld [vmem:[#allocation6 + $0xe8] sm:$0xff]  }
 0x205   :  { %v592_v45 = vmul.f32 1.442695, %v590_v37  ;;  %v591_v46 = vmin.f32 %v587_v39, 20.0  ;;  %v1963_v37 = vld [vmem:[#allocation6 + $0xa0] sm:$0xff]  }
 0x207   :  { %2026 = vpow2.f32 %v592_v45  ;;  %v594_v47 = vmul.f32 1.442695, %v591_v46  ;;  %v1966_v45 = vld [vmem:[#allocation6 + $0x28] sm:$0xff]  }
 0x208   :  { %v1967_v46 = vld [vmem:[#allocation6 + $0xa8] sm:$0xff]  }
 0x209   :  { %2028 = vpow2.f32 %v594_v47  ;;  %v1968_v47 = vld [vmem:[#allocation6 + $0x70] sm:$0xff]  }
 0x211   :  { %v2027_v48 = vpop.eup %2026 }
 0x212   :  { %v596_v49 = vadd.f32 2.0, %v2027_v48 }
 0x213   :  { %v2029_v43 = vpop.eup %2028 }
 0x214   :  { %v598_v51 = vmul.f32 %v2027_v48, %v596_v49  ;;  %v597_v52 = vadd.f32 2.0, %v2029_v43  ;;  %v1969_v48 = vld [vmem:[#allocation6 + $0xf0] sm:$0xff]  }
 0x215   :  { %v1970_v49 = vld [vmem:[#allocation6 + $0x30] sm:$0xff]  }
 0x216   :  { %v602_v50 = vadd.f32 2.0, %v598_v51  ;;  %v599_v53 = vmul.f32 %v2029_v43, %v597_v52  ;;  %v600_v57 = vmul.f32 %v598_v51, %v584_v13  ;;  %v1960_v13 = vld [vmem:[#allocation6 + $0x60] sm:$0xff]   ;;  %v1971_v43 = vld [vmem:[#allocation6 + $0xb0] sm:$0xff]   ;;  %v1972_v51 = vld [vmem:[#allocation6 + $0x78] sm:$0xff]  }
 0x217   :  { %v1973_v52 = vld [vmem:[#allocation6 + $0xf8] sm:$0xff]  }
 0x218   :  { %2030 = vrcp.f32 %v602_v50  ;;  %v603_v54 = vadd.f32 2.0, %v599_v53  ;;  %v601_v58 = vmul.f32 %v599_v53, %v587_v39  ;;  %v1964_v39 = vld [vmem:[#allocation6 + $0x68] sm:$0xff]   ;;  %v1974_v50 = vld [vmem:[#allocation6 + $0x38] sm:$0xff]  }
 0x219   :  { %v1975_v53 = vld [vmem:[#allocation6 + $0xb8] sm:$0xff]  }
 0x21a   :  { %2032 = vrcp.f32 %v603_v54  ;;  %v2472_v54 = vshrl.u32 %v89_v5, 7 }
 0x222   :  { %v2031_v56 = vpop.eup %2030 }
 0x223   :  { %v606_v15 = vmul.f32 %v2031_v56, %v600_v57  ;;  %v701_v56 = vsub.s32 0, %v2472_v54  ;;  %v709_v57 = vsub.s32 2, %v2472_v54 }
 0x224   :  { %v2033_v59 = vpop.eup %2032 }
 0x225   :  { %v607_v60 = vmul.f32 %v2033_v59, %v601_v58  ;;  %v1726_v58 = vld [vmem:[%s2568_s7 + $0x2] ss:$8 sm:$0xf]  ;;  %v705_v59 = vsub.s32 1, %v2472_v54 }
 0x227   :  { %v608_v33 = vpack.c.bf16 %v607_v60, %v606_v15  ;;  %v713_v15 = vsub.s32 3, %v2472_v54  ;;  %v702_v60 = vrot.slane %v1726_v58, %v701_v56  ;;  %v706_v5 = vrot.slane %v1726_v58, %v705_v59 }
 0x229   :  { %1888 = vmatmul.mubr.msk.bf16.vlgmr.msra.gmra.mrb[0].mxu1 %vm621_vm1, %v608_v33  ;;  %v710_v33 = vrot.slane %v1726_v58, %v709_v57  ;;  %v714_v61 = vrot.slane %v1726_v58, %v713_v15 }
 0x22a   :  { %858 = vmatprep.mubr.bf16.mxu1 %v2242_v0  ;;  %827 = vmatpush1.bf16.msra.mxu1 %v1929_v63 }
 0x22b   :  { %828 = vmatprep.subr.bf16.mxu1 %v1937_v7 }
 0x22e   :  { %829 = vmatpush1.bf16.msra.mxu1 %v1935_v3 }
 0x22f   :  { %830 = vmatprep.subr.bf16.mxu1 %v1943_v9 }
 0x232   :  { %831 = vmatpush1.bf16.msra.mxu1 %v1941_v10 }
 0x233   :  { %1833 = vmatprep.subr.bf16.mxu1 %v1945_v28 }
 0x2fc   :  { %v659_v12 = vpop.f32.mrb[0].mxu1 }
 0x2fd   :  { %v1889_v17 = vpop.f32.mrb[1].mxu1  ;;  %v660_v20 = vadd.f32 %v659_v12, %v537_v11 }
 0x2fe   :  { %v662_v18 = vpop.f32.mrb[2].mxu1 }
 0x2ff   :  { %v663_v22 = vadd.f32 %v662_v18, %v537_v11  ;;  %v1890_v23 = vpop.f32.mrb[3].mxu1 }
 0x301   :  { %v675_v21 = vpack.c.bf16 %v663_v22, %v660_v20 }
 0x303   :  { %677 = vrot.lane.b32.xlu1 %v675_v21, %s2251_s12 }
 0x375   :  { %v678_v24 = vpop.permute.xlu1 %677 }
 0x376   :  { %681 = vst.msk [vmem:[#allocation2] sm:$0xff] %vm680_vm5, %v678_v24 }
 0x37d   :  { %v685_v25 = vld [vmem:[#allocation2] sm:$0xff] }
 0x37e   :  { %1739 = vmatmul.mubr.msk.bf16.vlgmr.msra.gmra.mrb[4].mxu0 %vm779_vm6, %v685_v25  ;;  %1740 = vmatmul.mubr.msk.bf16.vlgmr.msra.gmra.mrb[4].mxu1 %vm779_vm6, %v685_v25 }
 0x37f   :  { %1812 = vmatpush3.bf16.msra.mxu0 %v1946_v29  ;;  %1834 = vmatpush3.bf16.msra.mxu1 %v1947_v30 }
 0x380   :  { %1813 = vmatprep.subr.bf16.mxu0 %v1948_v32  ;;  %1835 = vmatprep.subr.bf16.mxu1 %v1949_v34 }
 0x383   :  { %1814 = vmatpush3.bf16.msra.mxu0 %v1950_v35  ;;  %1836 = vmatpush3.bf16.msra.mxu1 %v1951_v36 }
 0x384   :  { %1815 = vmatprep.subr.bf16.mxu0 %v1952_v38  ;;  %1837 = vmatprep.subr.bf16.mxu1 %v1953_v40 }
 0x387   :  { %1816 = vmatpush3.bf16.msra.mxu0 %v1954_v42  ;;  %1838 = vmatpush3.bf16.msra.mxu1 %v1955_v14 }
 0x388   :  { %1817 = vmatprep.subr.bf16.mxu0 %v1956_v19  ;;  %1839 = vmatprep.subr.bf16.mxu1 %v1957_v6 }
 0x38b   :  { %1818 = vmatpush3.bf16.msra.mxu0 %v1958_v31  ;;  %1840 = vmatpush3.bf16.msra.mxu1 %v1959_v44 }
 0x38c   :  { %1819 = vmatprep.subr.bf16.mxu0 %v1960_v13  ;;  %1841 = vmatprep.subr.bf16.mxu1 %v1961_v16 }
 0x38f   :  { %1820 = vmatpush3.bf16.msra.mxu0 %v1962_v4  ;;  %1842 = vmatpush3.bf16.msra.mxu1 %v1963_v37 }
 0x390   :  { %1821 = vmatprep.subr.bf16.mxu0 %v1964_v39  ;;  %1843 = vmatprep.subr.bf16.mxu1 %v1965_v41 }
 0x393   :  { %1822 = vmatpush3.bf16.msra.mxu0 %v1966_v45  ;;  %1844 = vmatpush3.bf16.msra.mxu1 %v1967_v46 }
 0x394   :  { %1823 = vmatprep.subr.bf16.mxu0 %v1968_v47  ;;  %1845 = vmatprep.subr.bf16.mxu1 %v1969_v48 }
 0x397   :  { %1824 = vmatpush3.bf16.msra.mxu0 %v1970_v49  ;;  %1846 = vmatpush3.bf16.msra.mxu1 %v1971_v43 }
 0x398   :  { %1825 = vmatprep.subr.bf16.mxu0 %v1972_v51  ;;  %1847 = vmatprep.subr.bf16.mxu1 %v1973_v52 }
 0x39b   :  { %1826 = vmatpush3.bf16.msra.mxu0 %v1974_v50  ;;  %1848 = vmatpush3.bf16.msra.mxu1 %v1975_v53 }
 0x451   :  { %v817_v62 = vpop.f32.mrb[4].mxu0  ;;  %v860_v63 = vpop.f32.mrb[4].mxu1 }
 0x452   :  { %v2485_v55 = vadd.f32 %v817_v62, %v702_v60  ;;  %v2487_v1 = vadd.f32 %v860_v63, %v710_v33  ;;  %v819_v2 = vpop.f32.mrb[5].mxu0  ;;  %v862_v3 = vpop.f32.mrb[5].mxu1 }
 0x453   :  { %v2489_v7 = vadd.f32 %v819_v2, %v706_v5  ;;  %v2491_v8 = vadd.f32 %v862_v3, %v714_v61  ;;  %v821_v9 = vpop.f32.mrb[6].mxu0  ;;  %v864_v26 = vpop.f32.mrb[6].mxu1 }
 0x454   :  { %v869_v10 = vmin.f32 %v2485_v55, 20.0  ;;  %v871_v11 = vmin.f32 %v2487_v1, 20.0  ;;  %v2495_v12 = vadd.f32 %v821_v9, %v702_v60  ;;  %v2497_v17 = vadd.f32 %v864_v26, %v710_v33  ;;  %v823_v18 = vpop.f32.mrb[7].mxu0  ;;  %v866_v20 = vpop.f32.mrb[7].mxu1 }
 0x455   :  { %v870_v22 = vmin.f32 %v2489_v7, 20.0  ;;  %v872_v23 = vmin.f32 %v2491_v8, 20.0  ;;  %v2501_v21 = vadd.f32 %v823_v18, %v706_v5  ;;  %v2503_v24 = vadd.f32 %v866_v20, %v714_v61 }
 0x456   :  { %v877_v25 = vmul.f32 1.442695, %v869_v10  ;;  %v881_v27 = vmul.f32 1.442695, %v871_v11  ;;  %v873_v28 = vmin.f32 %v2495_v12, 20.0  ;;  %v875_v29 = vmin.f32 %v2497_v17, 20.0 }
 0x457   :  { %v879_v30 = vmul.f32 1.442695, %v870_v22  ;;  %v883_v32 = vmul.f32 1.442695, %v872_v23  ;;  %v874_v34 = vmin.f32 %v2501_v21, 20.0  ;;  %v876_v35 = vmin.f32 %v2503_v24, 20.0 }
 0x458   :  { %2034 = vpow2.f32 %v877_v25  ;;  %v885_v36 = vmul.f32 1.442695, %v873_v28  ;;  %v889_v38 = vmul.f32 1.442695, %v875_v29 }
 0x459   :  { %2036 = vpow2.f32 %v881_v27  ;;  %v887_v40 = vmul.f32 1.442695, %v874_v34  ;;  %v891_v42 = vmul.f32 1.442695, %v876_v35 }
 0x45a   :  { %2038 = vpow2.f32 %v879_v30 }
 0x45b   :  { %2040 = vpow2.f32 %v883_v32 }
 0x45c   :  { %2042 = vpow2.f32 %v885_v36 }
 0x45d   :  { %2044 = vpow2.f32 %v889_v38 }
 0x45e   :  { %2046 = vpow2.f32 %v887_v40 }
 0x45f   :  { %2048 = vpow2.f32 %v891_v42 }
 0x462   :  { %v2035_v14 = vpop.eup %2034 }
 0x463   :  { %v2037_v19 = vpop.eup %2036  ;;  %v893_v6 = vadd.f32 2.0, %v2035_v14 }
 0x464   :  { %v2039_v31 = vpop.eup %2038  ;;  %v895_v44 = vadd.f32 2.0, %v2037_v19 }
 0x465   :  { %v2041_v13 = vpop.eup %2040  ;;  %v901_v16 = vmul.f32 %v2035_v14, %v893_v6  ;;  %v894_v4 = vadd.f32 2.0, %v2039_v31 }
 0x466   :  { %v2043_v37 = vpop.eup %2042  ;;  %v903_v39 = vmul.f32 %v2037_v19, %v895_v44  ;;  %v896_v41 = vadd.f32 2.0, %v2041_v13  ;;  %v1979_v44 = vld [vmem:[#allocation8 + $0x10] ss:$8 sps:$4 sm:$0xff]  }
 0x467   :  { %v2045_v45 = vpop.eup %2044  ;;  %v917_v46 = vadd.f32 2.0, %v901_v16  ;;  %v902_v47 = vmul.f32 %v2039_v31, %v894_v4  ;;  %v897_v48 = vadd.f32 2.0, %v2043_v37  ;;  %v909_v10 = vmul.f32 %v901_v16, %v2485_v55  ;;  %v1987_v16 = vld [vmem:[#allocation8 + $0x34] ss:$8 sps:$4 sm:$0xff]   ;;  %v1985_v4 = vld [vmem:[#allocation8 + $0x30] ss:$8 sps:$4 sm:$0xff]  }
 0x468   :  { %v2047_v49 = vpop.eup %2046  ;;  %v919_v43 = vadd.f32 2.0, %v903_v39  ;;  %v904_v51 = vmul.f32 %v2041_v13, %v896_v41  ;;  %v899_v52 = vadd.f32 2.0, %v2045_v45  ;;  %v911_v20 = vmul.f32 %v903_v39, %v2487_v1  ;;  %v1982_v13 = vld [vmem:[#allocation8 + $0x20] ss:$8 sps:$4 sm:$0xff]   ;;  %v1991_v41 = vld [vmem:[#allocation8 + $0x50] ss:$8 sps:$4 sm:$0xff]  }
 0x469   :  { %v2049_v50 = vpop.eup %2048  ;;  %v905_v53 = vmul.f32 %v2043_v37, %v897_v48  ;;  %2050 = vrcp.f32 %v917_v46  ;;  %v918_v58 = vadd.f32 2.0, %v902_v47  ;;  %v898_v60 = vadd.f32 2.0, %v2047_v49  ;;  %v1990_v37 = vld [vmem:[#allocation8 + $0x44] ss:$8 sps:$4 sm:$0xff]   ;;  %v1988_v39 = vld [vmem:[#allocation8 + $0x40] ss:$8 sps:$4 sm:$0xff]  }
 0x46a   :  { %v907_v57 = vmul.f32 %v2045_v45, %v899_v52  ;;  %2052 = vrcp.f32 %v919_v43  ;;  %v920_v33 = vadd.f32 2.0, %v904_v51  ;;  %v900_v61 = vadd.f32 2.0, %v2049_v50  ;;  %v1996_v45 = vld [vmem:[#allocation8 + $0x64] ss:$8 sps:$4 sm:$0xff]   ;;  %v1994_v46 = vld [vmem:[#allocation8 + $0x60] ss:$8 sps:$4 sm:$0xff]  }
 0x46b   :  { %v921_v15 = vadd.f32 2.0, %v905_v53  ;;  %v906_v62 = vmul.f32 %v2047_v49, %v898_v60  ;;  %v913_v11 = vmul.f32 %v905_v53, %v2495_v12  ;;  %v910_v34 = vmul.f32 %v902_v47, %v2489_v7  ;;  %v1978_v7 = vld [vmem:[#allocation8 + $0x4] ss:$8 sps:$4 sm:$0xff]   ;;  %v1999_v47 = vld [vmem:[#allocation8 + $0x74] ss:$8 sps:$4 sm:$0xff]  }
 0x46c   :  { %v923_v5 = vadd.f32 2.0, %v907_v57  ;;  %v908_v63 = vmul.f32 %v2049_v50, %v900_v61  ;;  %v915_v22 = vmul.f32 %v907_v57, %v2497_v17  ;;  %v912_v12 = vmul.f32 %v904_v51, %v2491_v8  ;;  %1414 = vmatprep.subr.bf16.mxu0 %v1978_v7  ;;  %v1981_v8 = vld [vmem:[#allocation8 + $0x14] ss:$8 sps:$4 sm:$0xff]   ;;  %v1997_v48 = vld [vmem:[#allocation8 + $0x70] ss:$8 sps:$4 sm:$0xff]   ;;  %v2009_v7 = vld [vmem:[#allocation9 + $0x20] sm:$0xff]  }
 0x46d   :  { %2054 = vrcp.f32 %v921_v15  ;;  %v922_v2 = vadd.f32 2.0, %v906_v62  ;;  %v914_v36 = vmul.f32 %v906_v62, %v2501_v21  ;;  %v1976_v21 = vld [vmem:[#allocation8] ss:$8 sps:$4 sm:$0xff]   ;;  %v684_v51 = vld [vmem:[%s2568_s7 + $0x3] ss:$0 sm:$0xff] }
 0x46e   :  { %2056 = vrcp.f32 %v923_v5  ;;  %v924_v3 = vadd.f32 2.0, %v908_v63  ;;  %v916_v1 = vmul.f32 %v908_v63, %v2503_v24  ;;  %v1984_v24 = vld [vmem:[#allocation8 + $0x24] ss:$8 sps:$4 sm:$0xff]  }
 0x46f   :  { %2058 = vrcp.f32 %v918_v58 }
 0x470   :  { %2060 = vrcp.f32 %v920_v33 }
 0x471   :  { %2062 = vrcp.f32 %v922_v2 }
 0x472   :  { %2064 = vrcp.f32 %v924_v3 }
 0x473   :  { %v2051_v9 = vpop.eup %2050 }
 0x474   :  { %v2053_v26 = vpop.eup %2052  ;;  %v933_v25 = vmul.f32 %v2051_v9, %v909_v10 }
 0x475   :  { %v935_v29 = vmul.f32 %v2053_v26, %v911_v20 }
 0x477   :  { %v2055_v18 = vpop.eup %2054 }
 0x478   :  { %v2057_v23 = vpop.eup %2056  ;;  %v937_v27 = vmul.f32 %v2055_v18, %v913_v11 }
 0x479   :  { %v2059_v28 = vpop.eup %2058  ;;  %v939_v30 = vmul.f32 %v2057_v23, %v915_v22 }
 0x47a   :  { %v2061_v32 = vpop.eup %2060  ;;  %v941_v35 = vpack.c.bf16 %v937_v27, %v933_v25  ;;  %v934_v17 = vmul.f32 %v2059_v28, %v910_v34 }
 0x47b   :  { %v2063_v55 = vpop.eup %2062  ;;  %v943_v38 = vpack.c.bf16 %v939_v30, %v935_v29  ;;  %v936_v14 = vmul.f32 %v2061_v32, %v912_v12 }
 0x47c   :  { %v2065_v40 = vpop.eup %2064  ;;  %v938_v42 = vmul.f32 %v2063_v55, %v914_v36 }
 0x47d   :  { %v940_v19 = vmul.f32 %v2065_v40, %v916_v1  ;;  %v2001_v1 = vld [vmem:[#allocation9] sm:$0xff]   ;;  %v2002_v40 = vld [vmem:[#allocation9 + $0x48] sm:$0xff]  }
 0x47e   :  { %v942_v6 = vpack.c.bf16 %v938_v42, %v934_v17  ;;  %v2003_v17 = vld [vmem:[#allocation9 + $0x8] sm:$0xff]   ;;  %v2004_v42 = vld [vmem:[#allocation9 + $0x50] sm:$0xff]  }
 0x47f   :  { %v944_v31 = vpack.c.bf16 %v940_v19, %v936_v14  ;;  %v2005_v14 = vld [vmem:[#allocation9 + $0x10] sm:$0xff]   ;;  %v2006_v19 = vld [vmem:[#allocation9 + $0x58] sm:$0xff]  }
 0x480   :  { %1233 = vmatprep.mubr.bf16.mxu0 %v942_v6  ;;  %v2007_v6 = vld [vmem:[#allocation9 + $0x18] sm:$0xff]  }
 0x481   :  { %1274 = vmatprep.mubr.bf16.mxu1 %v944_v31  ;;  %1234 = vmatmul.mubr.bf16.vlgmr.msra.gmra.mrb[8].mxu0 %v941_v35  ;;  %v2008_v31 = vld [vmem:[#allocation9 + $0x60] sm:$0xff]  }
 0x482   :  { %1275 = vmatmul.mubr.bf16.vlgmr.msra.gmra.mrb[8].mxu1 %v943_v38  ;;  %1446 = vmatprep.mubr.bf16.mxu0 %v2242_v0  ;;  %v1993_v0 = vld [vmem:[#allocation8 + $0x54] ss:$8 sps:$4 sm:$0xff]   ;;  %v2000_v38 = vld [vmem:[#allocation9 + $0x40] sm:$0xff]  }
 0x483   :  { %1415 = vmatpush1.bf16.msra.mxu0 %v1976_v21  ;;  %1855 = vmatprep.subr.bf16.mxu1 %v2000_v38  ;;  %v2010_v21 = vld [vmem:[#allocation9 + $0x68] sm:$0xff]  }
 0x484   :  { %1416 = vmatprep.subr.bf16.mxu0 %v1981_v8  ;;  %1856 = vmatpush3.bf16.msra.mxu1 %v2001_v1  ;;  %v2011_v8 = vld [vmem:[#allocation9 + $0x28] sm:$0xff]  }
 0x485   :  { %1857 = vmatprep.subr.bf16.mxu1 %v2002_v40 }
 0x487   :  { %1417 = vmatpush1.bf16.msra.mxu0 %v1979_v44  ;;  %v2012_v44 = vld [vmem:[#allocation9 + $0x70] sm:$0xff]  }
 0x488   :  { %1418 = vmatprep.subr.bf16.mxu0 %v1984_v24  ;;  %1858 = vmatpush3.bf16.msra.mxu1 %v2003_v17  ;;  %v2013_v24 = vld [vmem:[#allocation9 + $0x30] sm:$0xff]  }
 0x489   :  { %1859 = vmatprep.subr.bf16.mxu1 %v2004_v42 }
 0x48b   :  { %1419 = vmatpush1.bf16.msra.mxu0 %v1982_v13  ;;  %v2014_v13 = vld [vmem:[#allocation9 + $0x78] sm:$0xff]  }
 0x48c   :  { %1420 = vmatprep.subr.bf16.mxu0 %v1987_v16  ;;  %1860 = vmatpush3.bf16.msra.mxu1 %v2005_v14  ;;  %v2015_v16 = vld [vmem:[#allocation9 + $0x38] sm:$0xff]  }
 0x48d   :  { %1861 = vmatprep.subr.bf16.mxu1 %v2006_v19 }
 0x48f   :  { %1421 = vmatpush1.bf16.msra.mxu0 %v1985_v4  ;;  %v1773_v4 = vld [vmem:[%s2568_s7 + $0x4] ss:$8 sm:$0x3] }
 0x490   :  { %1422 = vmatprep.subr.bf16.mxu0 %v1990_v37  ;;  %1862 = vmatpush3.bf16.msra.mxu1 %v2007_v6  ;;  %v1327_v37 = vrot.slane %v1773_v4, %v701_v56 }
 0x491   :  { %1863 = vmatprep.subr.bf16.mxu1 %v2008_v31 }
 0x493   :  { %1423 = vmatpush1.bf16.msra.mxu0 %v1988_v39  ;;  %v1331_v39 = vrot.slane %v1773_v4, %v705_v59 }
 0x494   :  { %1424 = vmatprep.subr.bf16.mxu0 %v1993_v0  ;;  %1864 = vmatpush3.bf16.msra.mxu1 %v2009_v7 }
 0x495   :  { %1865 = vmatprep.subr.bf16.mxu1 %v2010_v21 }
 0x497   :  { %1425 = vmatpush1.bf16.msra.mxu0 %v1991_v41 }
 0x498   :  { %1426 = vmatprep.subr.bf16.mxu0 %v1996_v45  ;;  %1866 = vmatpush3.bf16.msra.mxu1 %v2011_v8 }
 0x499   :  { %1867 = vmatprep.subr.bf16.mxu1 %v2012_v44 }
 0x49b   :  { %1427 = vmatpush1.bf16.msra.mxu0 %v1994_v46 }
 0x49c   :  { %1428 = vmatprep.subr.bf16.mxu0 %v1999_v47  ;;  %1868 = vmatpush3.bf16.msra.mxu1 %v2013_v24 }
 0x49d   :  { %1869 = vmatprep.subr.bf16.mxu1 %v2014_v13 }
 0x49f   :  { %1429 = vmatpush1.bf16.msra.mxu0 %v1997_v48 }
 0x4a0   :  { %1870 = vmatpush3.bf16.msra.mxu1 %v2015_v16 }
 0x554   :  { %v1827_v49 = vpop.f32.mrb[8].mxu0 }
 0x555   :  { %v1849_v43 = vpop.f32.mrb[8].mxu1  ;;  %v1828_v52 = vpop.f32.mrb[9].mxu0 }
 0x556   :  { %v1829_v50 = vadd.f32 %v1828_v52, %v1827_v49  ;;  %v1850_v53 = vpop.f32.mrb[9].mxu1  ;;  %v1830_v57 = vpop.f32.mrb[10].mxu0 }
 0x557   :  { %v1851_v58 = vadd.f32 %v1850_v53, %v1849_v43  ;;  %v1852_v15 = vpop.f32.mrb[10].mxu1  ;;  %v1831_v60 = vpop.f32.mrb[11].mxu0 }
 0x558   :  { %v1236_v33 = vadd.f32 %v1829_v50, %v684_v51  ;;  %v1832_v5 = vadd.f32 %v1831_v60, %v1830_v57  ;;  %v1853_v61 = vpop.f32.mrb[11].mxu1 }
 0x559   :  { %v1854_v62 = vadd.f32 %v1853_v61, %v1852_v15 }
 0x55a   :  { %v1277_v63 = vadd.f32 %v1851_v58, %v1236_v33  ;;  %v1239_v2 = vadd.f32 %v1832_v5, %v684_v51 }
 0x55c   :  { %v1283_v3 = vmin.f32 %v1277_v63, 20.0  ;;  %v1280_v9 = vadd.f32 %v1854_v62, %v1239_v2 }
 0x55e   :  { %v1285_v26 = vmul.f32 1.442695, %v1283_v3  ;;  %v1284_v10 = vmin.f32 %v1280_v9, 20.0 }
 0x560   :  { %2066 = vpow2.f32 %v1285_v26  ;;  %v1287_v11 = vmul.f32 1.442695, %v1284_v10 }
 0x562   :  { %2068 = vpow2.f32 %v1287_v11 }
 0x56a   :  { %v2067_v18 = vpop.eup %2066 }
 0x56b   :  { %v1289_v20 = vadd.f32 2.0, %v2067_v18 }
 0x56c   :  { %v2069_v22 = vpop.eup %2068 }
 0x56d   :  { %v1291_v23 = vmul.f32 %v2067_v18, %v1289_v20  ;;  %v1290_v25 = vadd.f32 2.0, %v2069_v22 }
 0x56f   :  { %v1295_v27 = vadd.f32 2.0, %v1291_v23  ;;  %v1292_v28 = vmul.f32 %v2069_v22, %v1290_v25  ;;  %v1293_v30 = vmul.f32 %v1291_v23, %v1277_v63 }
 0x571   :  { %2070 = vrcp.f32 %v1295_v27  ;;  %v1296_v29 = vadd.f32 2.0, %v1292_v28  ;;  %v1294_v35 = vmul.f32 %v1292_v28, %v1280_v9 }
 0x573   :  { %2072 = vrcp.f32 %v1296_v29 }
 0x57b   :  { %v2071_v32 = vpop.eup %2070 }
 0x57c   :  { %v1299_v34 = vmul.f32 %v2071_v32, %v1293_v30 }
 0x57d   :  { %v2073_v36 = vpop.eup %2072 }
 0x57e   :  { %1301 = vst [vmem:[#allocation11] sm:$0xff] %v1299_v34  ;;  %v1300_v55 = vmul.f32 %v2073_v36, %v1294_v35 }
 0x580   :  { %1302 = vst [vmem:[#allocation11 + $0x8] sm:$0xff] %v1300_v55  ;;  %v1306_v12 = vpack.c.bf16 %v1300_v55, %v1299_v34 }
 0x582   :  { %1447 = vmatmul.mubr.bf16.vlgmr.msra.gmra.mrb[12].mxu0 %v1306_v12 }
 0x655   :  { %v1448_v0 = vpop.f32.mrb[12].mxu0 }
 0x656   :  { %v1449_v41 = vadd.f32 %v1448_v0, %v1327_v37  ;;  %v1450_v45 = vpop.f32.mrb[13].mxu0 }
 0x657   :  { %v1451_v46 = vadd.f32 %v1450_v45, %v1331_v39  ;;  %v1452_v47 = vpop.f32.mrb[14].mxu0 }
 0x658   :  { %v1457_v48 = vmin.f32 %v1449_v41, 20.0  ;;  %v1453_v49 = vadd.f32 %v1452_v47, %v1327_v37  ;;  %v1454_v43 = vpop.f32.mrb[15].mxu0 }
 0x659   :  { %v1458_v51 = vmin.f32 %v1451_v46, 20.0  ;;  %v1455_v52 = vadd.f32 %v1454_v43, %v1331_v39 }
 0x65a   :  { %v1461_v50 = vmul.f32 1.442695, %v1457_v48  ;;  %v1459_v53 = vmin.f32 %v1453_v49, 20.0 }
 0x65b   :  { %v1463_v57 = vmul.f32 1.442695, %v1458_v51  ;;  %v1460_v58 = vmin.f32 %v1455_v52, 20.0 }
 0x65c   :  { %2074 = vpow2.f32 %v1461_v50  ;;  %v1465_v15 = vmul.f32 1.442695, %v1459_v53 }
 0x65d   :  { %2076 = vpow2.f32 %v1463_v57  ;;  %v1467_v56 = vmul.f32 1.442695, %v1460_v58 }
 0x65e   :  { %2078 = vpow2.f32 %v1465_v15 }
 0x65f   :  { %2080 = vpow2.f32 %v1467_v56 }
 0x666   :  { %v2075_v54 = vpop.eup %2074 }
 0x667   :  { %v2077_v59 = vpop.eup %2076  ;;  %v1469_v60 = vadd.f32 2.0, %v2075_v54 }
 0x668   :  { %v2079_v33 = vpop.eup %2078  ;;  %v1470_v5 = vadd.f32 2.0, %v2077_v59 }
 0x669   :  { %v2081_v61 = vpop.eup %2080  ;;  %v1473_v62 = vmul.f32 %v2075_v54, %v1469_v60  ;;  %v1471_v63 = vadd.f32 2.0, %v2079_v33 }
 0x66a   :  { %v1474_v2 = vmul.f32 %v2077_v59, %v1470_v5  ;;  %v1472_v3 = vadd.f32 2.0, %v2081_v61 }
 0x66b   :  { %v1481_v9 = vadd.f32 2.0, %v1473_v62  ;;  %v1475_v26 = vmul.f32 %v2079_v33, %v1471_v63  ;;  %v1477_v25 = vmul.f32 %v1473_v62, %v1449_v41 }
 0x66c   :  { %v1482_v10 = vadd.f32 2.0, %v1474_v2  ;;  %v1476_v11 = vmul.f32 %v2081_v61, %v1472_v3  ;;  %v1478_v29 = vmul.f32 %v1474_v2, %v1451_v46 }
 0x66d   :  { %2082 = vrcp.f32 %v1481_v9  ;;  %v1483_v18 = vadd.f32 2.0, %v1475_v26  ;;  %v1479_v27 = vmul.f32 %v1475_v26, %v1453_v49 }
 0x66e   :  { %2084 = vrcp.f32 %v1482_v10  ;;  %v1484_v20 = vadd.f32 2.0, %v1476_v11  ;;  %v1480_v30 = vmul.f32 %v1476_v11, %v1455_v52 }
 0x66f   :  { %2086 = vrcp.f32 %v1483_v18 }
 0x670   :  { %2088 = vrcp.f32 %v1484_v20 }
 0x677   :  { %v2083_v22 = vpop.eup %2082 }
 0x678   :  { %v2085_v23 = vpop.eup %2084  ;;  %v1489_v34 = vmul.f32 %v2083_v22, %v1477_v25 }
 0x679   :  { %v2087_v28 = vpop.eup %2086  ;;  %v1490_v36 = vmul.f32 %v2085_v23, %v1478_v29 }
 0x67a   :  { %v2089_v32 = vpop.eup %2088  ;;  %v1491_v35 = vmul.f32 %v2087_v28, %v1479_v27 }
 0x67b   :  { %v1492_v55 = vmul.f32 %v2089_v32, %v1480_v30 }
 0x67c   :  { %v1493_v12 = vpack.c.bf16 %v1491_v35, %v1489_v34 }
 0x67d   :  { %v1494_v38 = vpack.c.bf16 %v1492_v55, %v1490_v36 }
 0x67f   :  { %1655 = vmatprep.mubr.bf16.mxu1 %v1494_v38 }
 0x680   :  { %1656 = vmatmul.mubr.bf16.vlgmr.msra.gmra.mrb[12].mxu1 %v1493_v12 }
 0x681   :  { %2189 = shalt.err (!%p2186_p8)
}
 0x682   :  { %s2190_s23 = scalar_lea.hbm %s2569_s8, 256 }
 0x683   :  { %p2191_p9 = scmp.ne.s32.totalorder %s2569_s8, %s2190_s23  ;;  %p2194_p10 = scmp.lt.u32.totalorder %s2190_s23, %s2569_s8 }
 0x685   :  { %p2196_p11 = pnand %p2194_p10, %p2191_p9 }
 0x687   :  { %2199 = shalt.err (!%p2196_p11)
}
 0x688   :  { %1679 = dma.vmem_to_hbm [thread:$0]  %s1674_s5, 256, %s2569_s8, [#allocation5], %s2239_s3, %s2239_s3, %s2240_s24  }
 0x689   :  { %v1305_v40 = vld [vmem:[%s2568_s7 + $0x5] ss:$0 sm:$0xff]  ;;  %s2253_s29 = smov [#allocation12]  }
 0x68a   :  { %s1685_s30 = sshll.u32 %s2253_s29, 4  ;;  %s1686_s30 = int_to_ptr.vmem [resolvable:$true] %s1685_s30 }
 0x68b   :  { %s2200_s8 = scalar_lea.vmem %s1686_s30, 256  ;;  %p2205_p13 = scmp.lt.s32.totalorder %s1686_s30, %s1686_s30 }
 0x68c   :  { %p2201_p12 = scmp.ne.s32.totalorder %s1686_s30, %s2200_s8  ;;  %p2206_p0 = scmp.lt.s32.totalorder %s2200_s8, %s2200_s8 }
 0x68e   :  { %p2207_p1 = por %p2206_p0, %p2205_p13 }
 0x690   :  { %p2208_p2 = pnand %p2207_p1, %p2201_p12 }
 0x753   :  { %v1871_v1 = vpop.f32.mrb[12].mxu1 }
 0x754   :  { %v1872_v17 = vpop.f32.mrb[13].mxu1 }
 0x755   :  { %v1873_v42 = vadd.f32 %v1872_v17, %v1871_v1  ;;  %v1874_v14 = vpop.f32.mrb[14].mxu1 }
 0x756   :  { %v1875_v19 = vpop.f32.mrb[15].mxu1 }
 0x757   :  { %v1658_v6 = vadd.f32 %v1873_v42, %v1305_v40  ;;  %v1876_v31 = vadd.f32 %v1875_v19, %v1874_v14 }
 0x759   :  { %v1664_v7 = vmax.f32 %v1658_v6, 0.0  ;;  %v1661_v21 = vadd.f32 %v1876_v31, %v1305_v40 }
 0x75b   :  { %1666 = vst [vmem:[#allocation12] sm:$0xff] %v1664_v7  ;;  %v1665_v8 = vmax.f32 %v1661_v21, 0.0 }
 0x75d   :  { %1667 = vst [vmem:[#allocation12 + $0x8] sm:$0xff] %v1665_v8 }
 0x75e   :  { %2211 = shalt.err (!%p2208_p2)
}
 0x75f   :  { %s2212_s0 = scalar_lea.hbm %s2570_s9, 256 }
 0x760   :  { %p2213_p3 = scmp.ne.s32.totalorder %s2570_s9, %s2212_s0  ;;  %p2216_p4 = scmp.lt.u32.totalorder %s2212_s0, %s2570_s9 }
 0x762   :  { %p2218_p5 = pnand %p2216_p4, %p2213_p3 }
 0x764   :  { %2221 = shalt.err (!%p2218_p5)
}
 0x765   :  { %1691 = dma.vmem_to_hbm [thread:$0]  %s1686_s30, 256, %s2570_s9, [#allocation13], %s2239_s3, %s2239_s3, %s2240_s24  }
 0x766   :  { %2228 = dma.done.wait [#allocation5], 256  }
 0x767   :  { %2229 = vsyncadd [#allocation5], 4294967040 }
 0x768   :  { %2230 = dma.done.wait [#allocation13], 256  }
 0x769   :  { %2231 = vsyncadd [#allocation13], 4294967040 }
 0x76a   :  { %1698 = vsyncpa [#allocation4], 1 }
 0x76b   :  { %1699 = vsyncpa [#allocation7], 1 }
 0x76c   :  { %1700 = vsyncpa [#allocation10], 1 }
 0x76d   :  { %1701 = vsyncpa [#allocation5], 1 }
 0x76e   :  { %1702 = vsyncpa [#allocation13], 1 }

</bundles_post_ra>
